<compile_context>
chip_gen: v5e
topology: v5e:2x2
jax: 0.10.0
libtpu: 0.0.40
codegen_flags: <defaults>
</compile_context>

<pallas_src>
import jax
import jax.numpy as jnp
import numpy as np
from jax.experimental import pallas as pl
from jax.experimental.pallas import tpu as pltpu

LANE = 128


# -----------------------------------------------------------------------------
# Pallas kernel: one (batch, layer) step of the VITSPosteriorEncoder forward.
# -----------------------------------------------------------------------------
def make_encoder_kernel(Cin, Z, H, K, dilations, Tp, T_valid, PMAX, LPAD):
    L = len(dilations)
    f32 = jnp.float32
    bf16 = jnp.bfloat16

    def kernel(len_ref,                            # scalar-prefetch: (B,) int32 (SMEM)
               mel_ref, eps_ref,                   # (1, Cin, Tp) f32, (1, Z, Tp) f32
               pre_w_ref, pre_b_ref,               # (H, Cin) bf16, (H, 1) f32
               in_w_ref, in_b_ref,                 # (1, 2H, K*H) bf16, (1, 2H, 1) f32 (layer l)
               rs_w_ref, rs_b_ref,                 # (1, 2H, H) bf16, (1, 2H, 1) f32 (layer l)
               proj_w_ref, proj_b_ref,             # (2Z, H) bf16, (2Z, 1) f32
               m_ref, logs_ref, z_ref, mask_ref,   # outputs (resident across layer axis)
               pad_ref, skip_ref, mask_sc):        # VMEM scratch
        b = pl.program_id(0)
        l = pl.program_id(1)

        # --- once per batch element (l == 0): mask, halo zeroing, preprocess ---
        @pl.when(l == 0)
        def _init():
            # Length clamped to the un-padded T so lane padding [T_valid, Tp)
            # always behaves like the conv's zero padding.
            length = jnp.minimum(len_ref[b], T_valid)
            prog = jax.lax.broadcasted_iota(jnp.int32, (1, Tp), 1)
            mask = (prog < length).astype(f32)
            mask_sc[...] = mask
            mask_ref[0] = mask
            # Zero only the PMAX-wide halo columns; the interior is overwritten.
            if PMAX > 0:
                pad_ref[:, LPAD - PMAX:LPAD] = jnp.zeros((H, PMAX), f32)
                pad_ref[:, LPAD + Tp:LPAD + Tp + PMAX] = jnp.zeros((H, PMAX), f32)
            # Preprocess 1x1 conv == channel matmul (bf16 operands, f32 accumulate).
            x0 = (jnp.dot(pre_w_ref[...], mel_ref[0].astype(bf16),
                          preferred_element_type=f32)
                  + pre_b_ref[...]) * mask                                  # (H, Tp)
            pad_ref[:, LPAD:LPAD + Tp] = x0
            skip_ref[...] = jnp.zeros((H, Tp), f32)

        mask = mask_sc[...]                                                 # (1, Tp)

        # --- one WN layer per grid step; this layer's weights were streamed in ---
        # Fuse the K dilated taps into ONE large-contraction MXU matmul: the K
        # shifted views of x are stacked to (K*H, Tp); weights are (2H, K*H).
        # Dilations are static per layer -> static halo offsets per switch branch.
        def make_gather(d):
            p = d * (K - 1) // 2

            def gather():
                taps = [pad_ref[:, LPAD - p + k * d: LPAD - p + k * d + Tp]
                        for k in range(K)]
                return jnp.concatenate(taps, axis=0).astype(bf16)           # (K*H, Tp)

            return gather

        if len(set(dilations)) == 1:
            x_stack = make_gather(dilations[0])()
        else:
            # TODO(synk): dedupe identical-dilation branches via a layer->branch table.
            x_stack = jax.lax.switch(l, [make_gather(d) for d in dilations])

        acc = (jnp.dot(in_w_ref[0], x_stack, preferred_element_type=f32)
               + in_b_ref[0])                                               # (2H, Tp)
        # Gated activation (fused_add_tanh_sigmoid_multiply, g=None) in f32.
        acts = jnp.tanh(acc[:H]) * jax.nn.sigmoid(acc[H:])                  # (H, Tp)
        # res/skip 1x1 conv H -> 2H (last layer's residual half is zero by init).
        rs = (jnp.dot(rs_w_ref[0], acts.astype(bf16),
                      preferred_element_type=f32)
              + rs_b_ref[0])                                                # (2H, Tp)
        # Residual update in place in the shift scratch; accumulate the skip path.
        pad_ref[:, LPAD:LPAD + Tp] = (pad_ref[:, LPAD:LPAD + Tp] + rs[:H]) * mask
        skip_ref[...] = skip_ref[...] + rs[H:]

        # --- last layer: projection 1x1 conv, reparameterize, store outputs ---
        @pl.when(l == L - 1)
        def _finish():
            out = skip_ref[...] * mask
            stats = (jnp.dot(proj_w_ref[...], out.astype(bf16),
                             preferred_element_type=f32)
                     + proj_b_ref[...]) * mask                              # (2Z, Tp)
            m = stats[:Z]
            logs = stats[Z:]
            z = (m + eps_ref[0] * jnp.exp(logs)) * mask
            m_ref[0] = m
            logs_ref[0] = logs
            z_ref[0] = z

    return kernel


# -----------------------------------------------------------------------------
# Wrapper: pallas_call setup (grid over batch x layers; layer weights streamed).
# -----------------------------------------------------------------------------
def vits_posterior_encoder(mel, spec_length, eps, params, *, kernel_size, dilations):
    B, Cin, T = mel.shape
    H = params["pre_w"].shape[0]
    Z = params["proj_w"].shape[0] // 2
    K = kernel_size
    L = len(dilations)
    PMAX = max(d * (K - 1) // 2 for d in dilations)
    LPAD = ((PMAX + LANE - 1) // LANE) * LANE      # lane-aligned interior offset

    # Lane-dense time axis: pad T up to a multiple of 128.
    Tp = ((T + LANE - 1) // LANE) * LANE
    if Tp != T:
        mel = jnp.pad(mel, ((0, 0), (0, 0), (0, Tp - T)))
        eps = jnp.pad(eps, ((0, 0), (0, 0), (0, Tp - T)))

    bf16 = jnp.bfloat16
    pre_w = params["pre_w"].astype(bf16)
    # Fold the K taps into the contraction dim: (L, K, 2H, H) -> (L, 2H, K*H).
    in_w = jnp.transpose(params["in_w"], (0, 2, 1, 3)).reshape(L, 2 * H, K * H).astype(bf16)
    rs_w = params["rs_w"].astype(bf16)
    proj_w = params["proj_w"].astype(bf16)
    spec_length = spec_length.astype(jnp.int32)

    kernel = make_encoder_kernel(Cin, Z, H, K, tuple(dilations), Tp, T, PMAX, LPAD)

    grid_spec = pltpu.PrefetchScalarGridSpec(
        num_scalar_prefetch=1,                 # spec_length -> SMEM
        grid=(B, L),                           # batch (parallel) x WN layer (arbitrary)
        in_specs=[
            pl.BlockSpec((1, Cin, Tp), lambda b, l, lens: (b, 0, 0)),         # mel
            pl.BlockSpec((1, Z, Tp), lambda b, l, lens: (b, 0, 0)),           # eps
            pl.BlockSpec((H, Cin), lambda b, l, lens: (0, 0)),                # pre_w
            pl.BlockSpec((H, 1), lambda b, l, lens: (0, 0)),                  # pre_b
            pl.BlockSpec((1, 2 * H, K * H), lambda b, l, lens: (l, 0, 0)),    # in_w (streamed)
            pl.BlockSpec((1, 2 * H, 1), lambda b, l, lens: (l, 0, 0)),        # in_b (streamed)
            pl.BlockSpec((1, 2 * H, H), lambda b, l, lens: (l, 0, 0)),        # rs_w (streamed)
            pl.BlockSpec((1, 2 * H, 1), lambda b, l, lens: (l, 0, 0)),        # rs_b (streamed)
            pl.BlockSpec((2 * Z, H), lambda b, l, lens: (0, 0)),              # proj_w
            pl.BlockSpec((2 * Z, 1), lambda b, l, lens: (0, 0)),              # proj_b
        ],
        out_specs=[
            pl.BlockSpec((1, Z, Tp), lambda b, l, lens: (b, 0, 0)),           # m
            pl.BlockSpec((1, Z, Tp), lambda b, l, lens: (b, 0, 0)),           # logs
            pl.BlockSpec((1, Z, Tp), lambda b, l, lens: (b, 0, 0)),           # z
            pl.BlockSpec((1, 1, Tp), lambda b, l, lens: (b, 0, 0)),           # mask
        ],
        scratch_shapes=[
            pltpu.VMEM((H, LPAD + Tp + PMAX), jnp.float32),   # x + halos (in-place residual)
            pltpu.VMEM((H, Tp), jnp.float32),                 # skip accumulator
            pltpu.VMEM((1, Tp), jnp.float32),                 # cached sequence mask
        ],
    )
    out_shape = (
        jax.ShapeDtypeStruct((B, Z, Tp), jnp.float32),
        jax.ShapeDtypeStruct((B, Z, Tp), jnp.float32),
        jax.ShapeDtypeStruct((B, Z, Tp), jnp.float32),
        jax.ShapeDtypeStruct((B, 1, Tp), jnp.float32),
    )

    # VMEM budget (advisory): double-buffered blocks + persistent scratch.
    blk_bytes = (
        2 * Tp * 4 * (Cin + Z)                                 # mel + eps blocks
        + 2 * 2 * (2 * H * K * H + 2 * H * H)                  # per-layer bf16 weights
        + 2 * 4 * (2 * 2 * H)                                  # per-layer f32 biases
        + 2 * (H * Cin + 2 * Z * H) + 4 * (H + 2 * Z)          # invariant weights/biases
        + 2 * Tp * 4 * (3 * Z + 1)                             # output blocks
    )
    scratch_bytes = 4 * (H * (LPAD + Tp + PMAX) + H * Tp + Tp)
    # Clamp to 32..100 MiB; re-derive <= ~56 MiB when targeting v7x (64 MiB VMEM).
    vmem_limit = int(min(100 * 1024 * 1024,
                         max(32 * 1024 * 1024, 2 * (blk_bytes + scratch_bytes))))

    flops = 2 * B * Tp * (H * Cin + L * (K * H * 2 * H + H * 2 * H) + H * 2 * Z)
    transcendentals = B * Tp * (L * 2 * H + Z)
    bytes_accessed = int(
        4 * B * Tp * (Cin + Z)                                               # mel + eps
        + 2 * (pre_w.size + proj_w.size) + 4 * (H + 2 * Z)                   # invariant params
        + B * (2 * (in_w.size + rs_w.size)                                   # streamed weights
               + 4 * (params["in_b"].size + params["rs_b"].size))            # (refetched per b)
        + 4 * B * Tp * (3 * Z + 1))                                          # outputs

    fn = pl.pallas_call(
        kernel,
        grid_spec=grid_spec,
        out_shape=out_shape,
        compiler_params=pltpu.CompilerParams(
            dimension_semantics=("parallel", "arbitrary"),
            vmem_limit_bytes=vmem_limit,
        ),
        cost_estimate=pl.CostEstimate(
            flops=int(flops),
            transcendentals=int(transcendentals),
            bytes_accessed=bytes_accessed),
    )
    m, logs, z, mask = fn(spec_length, mel, eps,
                          pre_w, params["pre_b"],
                          in_w, params["in_b"],
                          rs_w, params["rs_b"],
                          proj_w, params["proj_b"])
    # Slice the lane padding back off.
    return m[..., :T], logs[..., :T], z[..., :T], mask[..., :T]


def vaegan_vocoder_forward(params, mel, spec_length, f0, eps, *, kernel_size, dilations):
    """VAEGANVocoder.forward. Encoder in Pallas; decoder source unavailable."""
    mu, logs, z, mask = vits_posterior_encoder(
        mel, spec_length, eps, params, kernel_size=kernel_size, dilations=dilations)
    del f0  # TODO(synk): consumed by the SiFiGANGenerator decoder (not provided).
    return mu, logs, z, mask


# -----------------------------------------------------------------------------
# Deterministic synthetic parameter init (shapes follow the module __init__).
# Note: the default dilation_rate=0.1 yields fractional dilations (invalid for
# nn.Conv1d); the demo uses an integer dilation_rate (VITS convention: d = rate**i).
# -----------------------------------------------------------------------------
def init_params(key, Cin, Z, H, K, L):
    ks = jax.random.split(key, 8)
    nrm = lambda k, s, sc: jax.random.normal(k, s, jnp.float32) * sc
    pre_w = nrm(ks[0], (H, Cin), 0.1)
    pre_b = nrm(ks[1], (H, 1), 0.1)
    in_w = nrm(ks[2], (L, K, 2 * H, H), 0.05)
    in_b = nrm(ks[3], (L, 2 * H, 1), 0.05)
    rs_w = nrm(ks[4], (L, 2 * H, H), 0.05)
    rs_b = nrm(ks[5], (L, 2 * H, 1), 0.05)
    # WN's last layer emits only H skip channels: zero the unused residual half.
    rs_w = rs_w.at[L - 1, :H].set(0.0)
    rs_b = rs_b.at[L - 1, :H].set(0.0)
    proj_w = nrm(ks[6], (2 * Z, H), 0.05)
    proj_b = nrm(ks[7], (2 * Z, 1), 0.05)
    return dict(pre_w=pre_w, pre_b=pre_b, in_w=in_w, in_b=in_b,
                rs_w=rs_w, rs_b=rs_b, proj_w=proj_w, proj_b=proj_b)


# -----------------------------------------------------------------------------
# Pure-JAX f32 reference (same math) for a correctness check.
# -----------------------------------------------------------------------------
def reference_encoder(mel, spec_length, eps, params, *, kernel_size, dilations):
    B, Cin, T = mel.shape
    H = params["pre_w"].shape[0]
    Z = params["proj_w"].shape[0] // 2
    K = kernel_size
    prog = jnp.arange(T, dtype=spec_length.dtype)[None, :]
    mask = (prog < spec_length[:, None]).astype(jnp.float32)[:, None, :]    # (B,1,T)
    x = (jnp.einsum("oc,bct->bot", params["pre_w"], mel) + params["pre_b"][None]) * mask
    out = jnp.zeros_like(x)
    for i, d in enumerate(dilations):
        p = d * (K - 1) // 2
        xp = jnp.pad(x, ((0, 0), (0, 0), (p, p)))
        acc = jnp.zeros((B, 2 * H, T), jnp.float32) + params["in_b"][i][None]
        for k in range(K):
            acc = acc + jnp.einsum("oc,bct->bot", params["in_w"][i, k],
                                   xp[:, :, k * d:k * d + T])
        acts = jnp.tanh(acc[:, :H]) * jax.nn.sigmoid(acc[:, H:])
        rs = jnp.einsum("oc,bct->bot", params["rs_w"][i], acts) + params["rs_b"][i][None]
        x = (x + rs[:, :H]) * mask
        out = out + rs[:, H:]
    out = out * mask
    stats = (jnp.einsum("oc,bct->bot", params["proj_w"], out)
             + params["proj_b"][None]) * mask
    m, logs = stats[:, :Z], stats[:, Z:]
    z = (m + eps * jnp.exp(logs)) * mask
    return m, logs, z, mask


if __name__ == "__main__":
    # Small shapes consistent with the module's forward (mel: (B, n_mel, T)).
    B, Cin, T = 2, 8, 16          # in_x_channels=8
    H, Z = 32, 16                 # hidden_channels=32, out_z_channels=16
    K, dil_rate, L = 5, 2, 2      # kernel_size=5, dilation_rate=2, n_resblock=2
    dilations = [dil_rate ** i for i in range(L)]

    key = jax.random.PRNGKey(0)
    k_par, k_mel, k_f0, k_eps = jax.random.split(key, 4)

    params = init_params(k_par, Cin, Z, H, K, L)
    mel = jax.random.normal(k_mel, (B, Cin, T), jnp.float32)
    spec_length = jnp.array([16, 11], dtype=jnp.int32)
    f0 = jax.random.normal(k_f0, (B, 1, T), jnp.float32)      # unused (decoder N/A)
    # torch.randn_like(m) equivalent noise for the reparameterization (explicit eps).
    eps = jax.random.normal(k_eps, (B, Z, T), jnp.float32)

    mu, logs, z, mask = jax.block_until_ready(
        vaegan_vocoder_forward(params, mel, spec_length, f0, eps,
                               kernel_size=K, dilations=dilations))

    mu_r, logs_r, z_r, mask_r = reference_encoder(
        mel, spec_length, eps, params, kernel_size=K, dilations=dilations)

    # bf16 MXU operands with f32 accumulation -> slightly looser tolerance.
    np.testing.assert_allclose(np.asarray(mask), np.asarray(mask_r), rtol=0, atol=0)
    np.testing.assert_allclose(np.asarray(mu), np.asarray(mu_r), rtol=1e-2, atol=1e-2)
    np.testing.assert_allclose(np.asarray(logs), np.asarray(logs_r), rtol=1e-2, atol=1e-2)
    np.testing.assert_allclose(np.asarray(z), np.asarray(z_r), rtol=1e-2, atol=1e-2)

    print("KERNEL_OK")
</pallas_src>

<mosaic_0001>
module attributes {stable_mosaic.version = 11 : i64} {
  func.func @kernel(%arg0: i32, %arg1: i32, %arg2: memref<2xi32, #tpu.memory_space<smem>>, %arg3: memref<1x8x128xf32, #tpu.memory_space<vmem>>, %arg4: memref<1x16x128xf32, #tpu.memory_space<vmem>>, %arg5: memref<32x8xbf16, #tpu.memory_space<vmem>>, %arg6: memref<32x1xf32, #tpu.memory_space<vmem>>, %arg7: memref<1x64x160xbf16, #tpu.memory_space<vmem>>, %arg8: memref<1x64x1xf32, #tpu.memory_space<vmem>>, %arg9: memref<1x64x32xbf16, #tpu.memory_space<vmem>>, %arg10: memref<1x64x1xf32, #tpu.memory_space<vmem>>, %arg11: memref<32x32xbf16, #tpu.memory_space<vmem>>, %arg12: memref<32x1xf32, #tpu.memory_space<vmem>>, %arg13: memref<1x16x128xf32, #tpu.memory_space<vmem>>, %arg14: memref<1x16x128xf32, #tpu.memory_space<vmem>>, %arg15: memref<1x16x128xf32, #tpu.memory_space<vmem>>, %arg16: memref<1x1x128xf32, #tpu.memory_space<vmem>>, %arg17: memref<32x260xf32, #tpu.memory_space<vmem>>, %arg18: memref<32x128xf32, #tpu.memory_space<vmem>>, %arg19: memref<1x128xf32, #tpu.memory_space<vmem>>) attributes {dimension_semantics = [#tpu.dimension_semantics<parallel>, #tpu.dimension_semantics<arbitrary>], iteration_bounds = array<i64: 2, 2>, scalar_prefetch = 1 : i64, scratch_operands = 3 : i64, tpu.core_type = #tpu.core_type<tc>, window_params = [{transform_indices = @transform_0, window_bounds = array<i64: 1, 8, 128>}, {transform_indices = @transform_1, window_bounds = array<i64: 1, 16, 128>}, {pipeline_mode = #tpu.pipeline_mode<synchronous>, transform_indices = @transform_2, window_bounds = array<i64: 32, 8>}, {pipeline_mode = #tpu.pipeline_mode<synchronous>, transform_indices = @transform_3, window_bounds = array<i64: 32, 1>}, {transform_indices = @transform_4, window_bounds = array<i64: 1, 64, 160>}, {transform_indices = @transform_5, window_bounds = array<i64: 1, 64, 1>}, {transform_indices = @transform_6, window_bounds = array<i64: 1, 64, 32>}, {transform_indices = @transform_7, window_bounds = array<i64: 1, 64, 1>}, {pipeline_mode = #tpu.pipeline_mode<synchronous>, transform_indices = @transform_8, window_bounds = array<i64: 32, 32>}, {pipeline_mode = #tpu.pipeline_mode<synchronous>, transform_indices = @transform_9, window_bounds = array<i64: 32, 1>}, {transform_indices = @transform_10, window_bounds = array<i64: 1, 16, 128>}, {transform_indices = @transform_11, window_bounds = array<i64: 1, 16, 128>}, {transform_indices = @transform_12, window_bounds = array<i64: 1, 16, 128>}, {transform_indices = @transform_13, window_bounds = array<i64: 1, 1, 128>}]} {
    %c0_i32 = arith.constant 0 : i32
    %0 = arith.cmpi eq, %arg1, %c0_i32 : i32
    %1 = arith.extui %0 : i1 to i32
    %c0_i32_0 = arith.constant 0 : i32
    %2 = arith.cmpi ne, %1, %c0_i32_0 : i32
    scf.if %2 {
      %45 = arith.index_cast %arg0 : i32 to index
      %46 = memref.load %arg2[%45] : memref<2xi32, #tpu.memory_space<smem>>
      %c16_i32 = arith.constant 16 : i32
      %47 = arith.minsi %46, %c16_i32 : i32
      %48 = tpu.iota {dimensions = array<i32: 1>} : vector<1x128xi32>
      %49 = vector.broadcast %47 : i32 to vector<1x128xi32>
      %50 = arith.cmpi slt, %48, %49 : vector<1x128xi32>
      %51 = arith.extui %50 : vector<1x128xi1> to vector<1x128xi32>
      %52 = arith.sitofp %51 : vector<1x128xi32> to vector<1x128xf32>
      %c0_27 = arith.constant 0 : index
      %c0_28 = arith.constant 0 : index
      %53 = vector.load %arg19[%c0_27, %c0_28] : memref<1x128xf32, #tpu.memory_space<vmem>>, vector<1x128xf32>
      tpu.vector_store %arg19[%c0_27, %c0_28], %52 {strides = array<i32>} : memref<1x128xf32, #tpu.memory_space<vmem>>, vector<1x128xf32>,
      %c0_29 = arith.constant 0 : index
      %c0_30 = arith.constant 0 : index
      %c0_31 = arith.constant 0 : index
      %54 = vector.load %arg16[%c0_29, %c0_30, %c0_31] : memref<1x1x128xf32, #tpu.memory_space<vmem>>, vector<1x1x128xf32>
      %55 = vector.shape_cast %54 : vector<1x1x128xf32> to vector<1x128xf32>
      %56 = vector.shape_cast %52 : vector<1x128xf32> to vector<1x1x128xf32>
      tpu.vector_store %arg16[%c0_29, %c0_30, %c0_31], %56 {strides = array<i32>} : memref<1x1x128xf32, #tpu.memory_space<vmem>>, vector<1x1x128xf32>,
      %cst_32 = arith.constant 0.000000e+00 : f32
      %57 = vector.broadcast %cst_32 : f32 to vector<32x4xf32>
      %c0_33 = arith.constant 0 : index
      %c124 = arith.constant 124 : index
      %58 = vector.load %arg17[%c0_33, %c124] : memref<32x260xf32, #tpu.memory_space<vmem>>, vector<32x4xf32>
      tpu.vector_store %arg17[%c0_33, %c124], %57 {strides = array<i32>} : memref<32x260xf32, #tpu.memory_space<vmem>>, vector<32x4xf32>,
      %cst_34 = arith.constant 0.000000e+00 : f32
      %59 = vector.broadcast %cst_34 : f32 to vector<32x4xf32>
      %c0_35 = arith.constant 0 : index
      %c256 = arith.constant 256 : index
      %60 = vector.load %arg17[%c0_35, %c256] : memref<32x260xf32, #tpu.memory_space<vmem>>, vector<32x4xf32>
      tpu.vector_store %arg17[%c0_35, %c256], %59 {strides = array<i32>} : memref<32x260xf32, #tpu.memory_space<vmem>>, vector<32x4xf32>,
      %c0_36 = arith.constant 0 : index
      %c0_37 = arith.constant 0 : index
      %61 = vector.load %arg5[%c0_36, %c0_37] : memref<32x8xbf16, #tpu.memory_space<vmem>>, vector<32x8xbf16>
      %c0_38 = arith.constant 0 : index
      %c0_39 = arith.constant 0 : index
      %c0_40 = arith.constant 0 : index
      %62 = vector.load %arg3[%c0_38, %c0_39, %c0_40] : memref<1x8x128xf32, #tpu.memory_space<vmem>>, vector<1x8x128xf32>
      %63 = vector.shape_cast %62 : vector<1x8x128xf32> to vector<8x128xf32>
      %64 = arith.truncf %63 : vector<8x128xf32> to vector<8x128xbf16>
      %cst_41 = arith.constant dense<0.000000e+00> : vector<32x128xf32>
      %65 = tpu.matmul %61, %64, %cst_41 {dimension_numbers = #tpu.dot_dimension_numbers<[1], [0], [0], [1], [0, 0, 1, 1], [], []>} : vector<32x8xbf16>, vector<8x128xbf16>, vector<32x128xf32> -> vector<32x128xf32>
      %c0_42 = arith.constant 0 : index
      %c0_43 = arith.constant 0 : index
      %66 = vector.load %arg6[%c0_42, %c0_43] : memref<32x1xf32, #tpu.memory_space<vmem>>, vector<32x1xf32>
      %67 = vector.broadcast %66 : vector<32x1xf32> to vector<32x128xf32>
      %68 = arith.addf %65, %67 : vector<32x128xf32>
      %69 = vector.broadcast %52 : vector<1x128xf32> to vector<32x128xf32>
      %70 = arith.mulf %68, %69 : vector<32x128xf32>
      %c0_44 = arith.constant 0 : index
      %c128_45 = arith.constant 128 : index
      %71 = vector.load %arg17[%c0_44, %c128_45] : memref<32x260xf32, #tpu.memory_space<vmem>>, vector<32x128xf32>
      tpu.vector_store %arg17[%c0_44, %c128_45], %70 {strides = array<i32>} : memref<32x260xf32, #tpu.memory_space<vmem>>, vector<32x128xf32>,
      %cst_46 = arith.constant 0.000000e+00 : f32
      %72 = vector.broadcast %cst_46 : f32 to vector<32x128xf32>
      %c0_47 = arith.constant 0 : index
      %c0_48 = arith.constant 0 : index
      %73 = vector.load %arg18[%c0_47, %c0_48] : memref<32x128xf32, #tpu.memory_space<vmem>>, vector<32x128xf32>
      tpu.vector_store %arg18[%c0_47, %c0_48], %72 {strides = array<i32>} : memref<32x128xf32, #tpu.memory_space<vmem>>, vector<32x128xf32>,
    } else {
    }
    %c0 = arith.constant 0 : index
    %c0_1 = arith.constant 0 : index
    %3 = vector.load %arg19[%c0, %c0_1] : memref<1x128xf32, #tpu.memory_space<vmem>>, vector<1x128xf32>
    %c0_i32_2 = arith.constant 0 : i32
    %c1_i32 = arith.constant 1 : i32
    %4 = arith.maxsi %arg1, %c0_i32_2 : i32
    %5 = arith.minsi %4, %c1_i32 : i32
    %c0_i32_3 = arith.constant 0 : i32
    %6 = arith.cmpi ne, %5, %c0_i32_3 : i32
    %7 = scf.if %6 -> (vector<160x128xbf16>) {
      %c0_27 = arith.constant 0 : index
      %c124 = arith.constant 124 : index
      %45 = vector.load %arg17[%c0_27, %c124] : memref<32x260xf32, #tpu.memory_space<vmem>>, vector<32x128xf32>
      %c0_28 = arith.constant 0 : index
      %c126 = arith.constant 126 : index
      %46 = vector.load %arg17[%c0_28, %c126] : memref<32x260xf32, #tpu.memory_space<vmem>>, vector<32x128xf32>
      %c0_29 = arith.constant 0 : index
      %c128_30 = arith.constant 128 : index
      %47 = vector.load %arg17[%c0_29, %c128_30] : memref<32x260xf32, #tpu.memory_space<vmem>>, vector<32x128xf32>
      %c0_31 = arith.constant 0 : index
      %c130 = arith.constant 130 : index
      %48 = vector.load %arg17[%c0_31, %c130] : memref<32x260xf32, #tpu.memory_space<vmem>>, vector<32x128xf32>
      %c0_32 = arith.constant 0 : index
      %c132 = arith.constant 132 : index
      %49 = vector.load %arg17[%c0_32, %c132] : memref<32x260xf32, #tpu.memory_space<vmem>>, vector<32x128xf32>
      %50 = tpu.concatenate %45, %46, %47, %48, %49 in 0 : vector<32x128xf32>, vector<32x128xf32>, vector<32x128xf32>, vector<32x128xf32>, vector<32x128xf32> -> vector<160x128xf32>
      %51 = arith.truncf %50 : vector<160x128xf32> to vector<160x128xbf16>
      scf.yield %51 : vector<160x128xbf16>
    } else {
      %c0_27 = arith.constant 0 : index
      %c126 = arith.constant 126 : index
      %45 = vector.load %arg17[%c0_27, %c126] : memref<32x260xf32, #tpu.memory_space<vmem>>, vector<32x128xf32>
      %c0_28 = arith.constant 0 : index
      %c127 = arith.constant 127 : index
      %46 = vector.load %arg17[%c0_28, %c127] : memref<32x260xf32, #tpu.memory_space<vmem>>, vector<32x128xf32>
      %c0_29 = arith.constant 0 : index
      %c128_30 = arith.constant 128 : index
      %47 = vector.load %arg17[%c0_29, %c128_30] : memref<32x260xf32, #tpu.memory_space<vmem>>, vector<32x128xf32>
      %c0_31 = arith.constant 0 : index
      %c129 = arith.constant 129 : index
      %48 = vector.load %arg17[%c0_31, %c129] : memref<32x260xf32, #tpu.memory_space<vmem>>, vector<32x128xf32>
      %c0_32 = arith.constant 0 : index
      %c130 = arith.constant 130 : index
      %49 = vector.load %arg17[%c0_32, %c130] : memref<32x260xf32, #tpu.memory_space<vmem>>, vector<32x128xf32>
      %50 = tpu.concatenate %45, %46, %47, %48, %49 in 0 : vector<32x128xf32>, vector<32x128xf32>, vector<32x128xf32>, vector<32x128xf32>, vector<32x128xf32> -> vector<160x128xf32>
      %51 = arith.truncf %50 : vector<160x128xf32> to vector<160x128xbf16>
      scf.yield %51 : vector<160x128xbf16>
    }
    %c0_4 = arith.constant 0 : index
    %c0_5 = arith.constant 0 : index
    %c0_6 = arith.constant 0 : index
    %8 = vector.load %arg7[%c0_4, %c0_5, %c0_6] : memref<1x64x160xbf16, #tpu.memory_space<vmem>>, vector<1x64x160xbf16>
    %9 = vector.shape_cast %8 : vector<1x64x160xbf16> to vector<64x160xbf16>
    %cst = arith.constant dense<0.000000e+00> : vector<64x128xf32>
    %10 = tpu.matmul %9, %7, %cst {dimension_numbers = #tpu.dot_dimension_numbers<[1], [0], [0], [1], [0, 0, 1, 1], [], []>} : vector<64x160xbf16>, vector<160x128xbf16>, vector<64x128xf32> -> vector<64x128xf32>
    %c0_7 = arith.constant 0 : index
    %c0_8 = arith.constant 0 : index
    %c0_9 = arith.constant 0 : index
    %11 = vector.load %arg8[%c0_7, %c0_8, %c0_9] : memref<1x64x1xf32, #tpu.memory_space<vmem>>, vector<1x64x1xf32>
    %12 = vector.shape_cast %11 : vector<1x64x1xf32> to vector<64x1xf32>
    %13 = vector.broadcast %12 : vector<64x1xf32> to vector<64x128xf32>
    %14 = arith.addf %10, %13 : vector<64x128xf32>
    %15 = vector.extract_strided_slice %14 {offsets = [0, 0], sizes = [32, 128], strides = [1, 1]} : vector<64x128xf32> to vector<32x128xf32>
    %16 = math.tanh %15 : vector<32x128xf32>
    %17 = vector.extract_strided_slice %14 {offsets = [32, 0], sizes = [32, 128], strides = [1, 1]} : vector<64x128xf32> to vector<32x128xf32>
    %18 = arith.negf %17 : vector<32x128xf32>
    %19 = math.exp %18 : vector<32x128xf32>
    %cst_10 = arith.constant 1.000000e+00 : f32
    %20 = vector.broadcast %cst_10 : f32 to vector<32x128xf32>
    %21 = arith.addf %20, %19 : vector<32x128xf32>
    %22 = arith.divf %20, %21 : vector<32x128xf32>
    %23 = arith.mulf %16, %22 : vector<32x128xf32>
    %c0_11 = arith.constant 0 : index
    %c0_12 = arith.constant 0 : index
    %c0_13 = arith.constant 0 : index
    %24 = vector.load %arg9[%c0_11, %c0_12, %c0_13] : memref<1x64x32xbf16, #tpu.memory_space<vmem>>, vector<1x64x32xbf16>
    %25 = vector.shape_cast %24 : vector<1x64x32xbf16> to vector<64x32xbf16>
    %26 = arith.truncf %23 : vector<32x128xf32> to vector<32x128xbf16>
    %cst_14 = arith.constant dense<0.000000e+00> : vector<64x128xf32>
    %27 = tpu.matmul %25, %26, %cst_14 {dimension_numbers = #tpu.dot_dimension_numbers<[1], [0], [0], [1], [0, 0, 1, 1], [], []>} : vector<64x32xbf16>, vector<32x128xbf16>, vector<64x128xf32> -> vector<64x128xf32>
    %c0_15 = arith.constant 0 : index
    %c0_16 = arith.constant 0 : index
    %c0_17 = arith.constant 0 : index
    %28 = vector.load %arg10[%c0_15, %c0_16, %c0_17] : memref<1x64x1xf32, #tpu.memory_space<vmem>>, vector<1x64x1xf32>
    %29 = vector.shape_cast %28 : vector<1x64x1xf32> to vector<64x1xf32>
    %30 = vector.broadcast %29 : vector<64x1xf32> to vector<64x128xf32>
    %31 = arith.addf %27, %30 : vector<64x128xf32>
    %c0_18 = arith.constant 0 : index
    %c128 = arith.constant 128 : index
    %32 = vector.load %arg17[%c0_18, %c128] : memref<32x260xf32, #tpu.memory_space<vmem>>, vector<32x128xf32>
    %33 = vector.extract_strided_slice %31 {offsets = [0, 0], sizes = [32, 128], strides = [1, 1]} : vector<64x128xf32> to vector<32x128xf32>
    %34 = arith.addf %32, %33 : vector<32x128xf32>
    %35 = vector.broadcast %3 : vector<1x128xf32> to vector<32x128xf32>
    %36 = arith.mulf %34, %35 : vector<32x128xf32>
    %c0_19 = arith.constant 0 : index
    %c128_20 = arith.constant 128 : index
    %37 = vector.load %arg17[%c0_19, %c128_20] : memref<32x260xf32, #tpu.memory_space<vmem>>, vector<32x128xf32>
    tpu.vector_store %arg17[%c0_19, %c128_20], %36 {strides = array<i32>} : memref<32x260xf32, #tpu.memory_space<vmem>>, vector<32x128xf32>,
    %c0_21 = arith.constant 0 : index
    %c0_22 = arith.constant 0 : index
    %38 = vector.load %arg18[%c0_21, %c0_22] : memref<32x128xf32, #tpu.memory_space<vmem>>, vector<32x128xf32>
    %39 = vector.extract_strided_slice %31 {offsets = [32, 0], sizes = [32, 128], strides = [1, 1]} : vector<64x128xf32> to vector<32x128xf32>
    %40 = arith.addf %38, %39 : vector<32x128xf32>
    %c0_23 = arith.constant 0 : index
    %c0_24 = arith.constant 0 : index
    %41 = vector.load %arg18[%c0_23, %c0_24] : memref<32x128xf32, #tpu.memory_space<vmem>>, vector<32x128xf32>
    tpu.vector_store %arg18[%c0_23, %c0_24], %40 {strides = array<i32>} : memref<32x128xf32, #tpu.memory_space<vmem>>, vector<32x128xf32>,
    %c1_i32_25 = arith.constant 1 : i32
    %42 = arith.cmpi eq, %arg1, %c1_i32_25 : i32
    %43 = arith.extui %42 : i1 to i32
    %c0_i32_26 = arith.constant 0 : i32
    %44 = arith.cmpi ne, %43, %c0_i32_26 : i32
    scf.if %44 {
      %c0_27 = arith.constant 0 : index
      %c0_28 = arith.constant 0 : index
      %45 = vector.load %arg18[%c0_27, %c0_28] : memref<32x128xf32, #tpu.memory_space<vmem>>, vector<32x128xf32>
      %46 = vector.broadcast %3 : vector<1x128xf32> to vector<32x128xf32>
      %47 = arith.mulf %45, %46 : vector<32x128xf32>
      %c0_29 = arith.constant 0 : index
      %c0_30 = arith.constant 0 : index
      %48 = vector.load %arg11[%c0_29, %c0_30] : memref<32x32xbf16, #tpu.memory_space<vmem>>, vector<32x32xbf16>
      %49 = arith.truncf %47 : vector<32x128xf32> to vector<32x128xbf16>
      %cst_31 = arith.constant dense<0.000000e+00> : vector<32x128xf32>
      %50 = tpu.matmul %48, %49, %cst_31 {dimension_numbers = #tpu.dot_dimension_numbers<[1], [0], [0], [1], [0, 0, 1, 1], [], []>} : vector<32x32xbf16>, vector<32x128xbf16>, vector<32x128xf32> -> vector<32x128xf32>
      %c0_32 = arith.constant 0 : index
      %c0_33 = arith.constant 0 : index
      %51 = vector.load %arg12[%c0_32, %c0_33] : memref<32x1xf32, #tpu.memory_space<vmem>>, vector<32x1xf32>
      %52 = vector.broadcast %51 : vector<32x1xf32> to vector<32x128xf32>
      %53 = arith.addf %50, %52 : vector<32x128xf32>
      %54 = vector.broadcast %3 : vector<1x128xf32> to vector<32x128xf32>
      %55 = arith.mulf %53, %54 : vector<32x128xf32>
      %56 = vector.extract_strided_slice %55 {offsets = [0, 0], sizes = [16, 128], strides = [1, 1]} : vector<32x128xf32> to vector<16x128xf32>
      %57 = vector.extract_strided_slice %55 {offsets = [16, 0], sizes = [16, 128], strides = [1, 1]} : vector<32x128xf32> to vector<16x128xf32>
      %c0_34 = arith.constant 0 : index
      %c0_35 = arith.constant 0 : index
      %c0_36 = arith.constant 0 : index
      %58 = vector.load %arg4[%c0_34, %c0_35, %c0_36] : memref<1x16x128xf32, #tpu.memory_space<vmem>>, vector<1x16x128xf32>
      %59 = vector.shape_cast %58 : vector<1x16x128xf32> to vector<16x128xf32>
      %60 = math.exp %57 : vector<16x128xf32>
      %61 = arith.mulf %59, %60 : vector<16x128xf32>
      %62 = arith.addf %56, %61 : vector<16x128xf32>
      %63 = vector.broadcast %3 : vector<1x128xf32> to vector<16x128xf32>
      %64 = arith.mulf %62, %63 : vector<16x128xf32>
      %c0_37 = arith.constant 0 : index
      %c0_38 = arith.constant 0 : index
      %c0_39 = arith.constant 0 : index
      %65 = vector.load %arg13[%c0_37, %c0_38, %c0_39] : memref<1x16x128xf32, #tpu.memory_space<vmem>>, vector<1x16x128xf32>
      %66 = vector.shape_cast %65 : vector<1x16x128xf32> to vector<16x128xf32>
      %67 = vector.shape_cast %56 : vector<16x128xf32> to vector<1x16x128xf32>
      tpu.vector_store %arg13[%c0_37, %c0_38, %c0_39], %67 {strides = array<i32>} : memref<1x16x128xf32, #tpu.memory_space<vmem>>, vector<1x16x128xf32>,
      %c0_40 = arith.constant 0 : index
      %c0_41 = arith.constant 0 : index
      %c0_42 = arith.constant 0 : index
      %68 = vector.load %arg14[%c0_40, %c0_41, %c0_42] : memref<1x16x128xf32, #tpu.memory_space<vmem>>, vector<1x16x128xf32>
      %69 = vector.shape_cast %68 : vector<1x16x128xf32> to vector<16x128xf32>
      %70 = vector.shape_cast %57 : vector<16x128xf32> to vector<1x16x128xf32>
      tpu.vector_store %arg14[%c0_40, %c0_41, %c0_42], %70 {strides = array<i32>} : memref<1x16x128xf32, #tpu.memory_space<vmem>>, vector<1x16x128xf32>,
      %c0_43 = arith.constant 0 : index
      %c0_44 = arith.constant 0 : index
      %c0_45 = arith.constant 0 : index
      %71 = vector.load %arg15[%c0_43, %c0_44, %c0_45] : memref<1x16x128xf32, #tpu.memory_space<vmem>>, vector<1x16x128xf32>
      %72 = vector.shape_cast %71 : vector<1x16x128xf32> to vector<16x128xf32>
      %73 = vector.shape_cast %64 : vector<16x128xf32> to vector<1x16x128xf32>
      tpu.vector_store %arg15[%c0_43, %c0_44, %c0_45], %73 {strides = array<i32>} : memref<1x16x128xf32, #tpu.memory_space<vmem>>, vector<1x16x128xf32>,
    } else {
    }
    return
  }
  func.func @transform_0(%arg0: i32, %arg1: i32, %arg2: memref<2xi32, #tpu.memory_space<smem>>) -> (i32, i32, i32) {
    %c0_i32 = arith.constant 0 : i32
    %c0_i32_0 = arith.constant 0 : i32
    %c0_i32_1 = arith.constant 0 : i32
    return %arg0, %c0_i32, %c0_i32_0 : i32, i32, i32
  }
  func.func @transform_1(%arg0: i32, %arg1: i32, %arg2: memref<2xi32, #tpu.memory_space<smem>>) -> (i32, i32, i32) {
    %c0_i32 = arith.constant 0 : i32
    %c0_i32_0 = arith.constant 0 : i32
    %c0_i32_1 = arith.constant 0 : i32
    return %arg0, %c0_i32, %c0_i32_0 : i32, i32, i32
  }
  func.func @transform_2(%arg0: i32, %arg1: i32, %arg2: memref<2xi32, #tpu.memory_space<smem>>) -> (i32, i32) {
    %c0_i32 = arith.constant 0 : i32
    %c0_i32_0 = arith.constant 0 : i32
    %c0_i32_1 = arith.constant 0 : i32
    return %c0_i32, %c0_i32_0 : i32, i32
  }
  func.func @transform_3(%arg0: i32, %arg1: i32, %arg2: memref<2xi32, #tpu.memory_space<smem>>) -> (i32, i32) {
    %c0_i32 = arith.constant 0 : i32
    %c0_i32_0 = arith.constant 0 : i32
    %c0_i32_1 = arith.constant 0 : i32
    return %c0_i32, %c0_i32_0 : i32, i32
  }
  func.func @transform_4(%arg0: i32, %arg1: i32, %arg2: memref<2xi32, #tpu.memory_space<smem>>) -> (i32, i32, i32) {
    %c0_i32 = arith.constant 0 : i32
    %c0_i32_0 = arith.constant 0 : i32
    %c0_i32_1 = arith.constant 0 : i32
    return %arg1, %c0_i32, %c0_i32_0 : i32, i32, i32
  }
  func.func @transform_5(%arg0: i32, %arg1: i32, %arg2: memref<2xi32, #tpu.memory_space<smem>>) -> (i32, i32, i32) {
    %c0_i32 = arith.constant 0 : i32
    %c0_i32_0 = arith.constant 0 : i32
    %c0_i32_1 = arith.constant 0 : i32
    return %arg1, %c0_i32, %c0_i32_0 : i32, i32, i32
  }
  func.func @transform_6(%arg0: i32, %arg1: i32, %arg2: memref<2xi32, #tpu.memory_space<smem>>) -> (i32, i32, i32) {
    %c0_i32 = arith.constant 0 : i32
    %c0_i32_0 = arith.constant 0 : i32
    %c0_i32_1 = arith.constant 0 : i32
    return %arg1, %c0_i32, %c0_i32_0 : i32, i32, i32
  }
  func.func @transform_7(%arg0: i32, %arg1: i32, %arg2: memref<2xi32, #tpu.memory_space<smem>>) -> (i32, i32, i32) {
    %c0_i32 = arith.constant 0 : i32
    %c0_i32_0 = arith.constant 0 : i32
    %c0_i32_1 = arith.constant 0 : i32
    return %arg1, %c0_i32, %c0_i32_0 : i32, i32, i32
  }
  func.func @transform_8(%arg0: i32, %arg1: i32, %arg2: memref<2xi32, #tpu.memory_space<smem>>) -> (i32, i32) {
    %c0_i32 = arith.constant 0 : i32
    %c0_i32_0 = arith.constant 0 : i32
    %c0_i32_1 = arith.constant 0 : i32
    return %c0_i32, %c0_i32_0 : i32, i32
  }
  func.func @transform_9(%arg0: i32, %arg1: i32, %arg2: memref<2xi32, #tpu.memory_space<smem>>) -> (i32, i32) {
    %c0_i32 = arith.constant 0 : i32
    %c0_i32_0 = arith.constant 0 : i32
    %c0_i32_1 = arith.constant 0 : i32
    return %c0_i32, %c0_i32_0 : i32, i32
  }
  func.func @transform_10(%arg0: i32, %arg1: i32, %arg2: memref<2xi32, #tpu.memory_space<smem>>) -> (i32, i32, i32) {
    %c0_i32 = arith.constant 0 : i32
    %c0_i32_0 = arith.constant 0 : i32
    %c0_i32_1 = arith.constant 0 : i32
    return %arg0, %c0_i32, %c0_i32_0 : i32, i32, i32
  }
  func.func @transform_11(%arg0: i32, %arg1: i32, %arg2: memref<2xi32, #tpu.memory_space<smem>>) -> (i32, i32, i32) {
    %c0_i32 = arith.constant 0 : i32
    %c0_i32_0 = arith.constant 0 : i32
    %c0_i32_1 = arith.constant 0 : i32
    return %arg0, %c0_i32, %c0_i32_0 : i32, i32, i32
  }
  func.func @transform_12(%arg0: i32, %arg1: i32, %arg2: memref<2xi32, #tpu.memory_space<smem>>) -> (i32, i32, i32) {
    %c0_i32 = arith.constant 0 : i32
    %c0_i32_0 = arith.constant 0 : i32
    %c0_i32_1 = arith.constant 0 : i32
    return %arg0, %c0_i32, %c0_i32_0 : i32, i32, i32
  }
  func.func @transform_13(%arg0: i32, %arg1: i32, %arg2: memref<2xi32, #tpu.memory_space<smem>>) -> (i32, i32, i32) {
    %c0_i32 = arith.constant 0 : i32
    %c0_i32_0 = arith.constant 0 : i32
    %c0_i32_1 = arith.constant 0 : i32
    return %arg0, %c0_i32, %c0_i32_0 : i32, i32, i32
  }
}

</mosaic_0001>

<bundles_post_ra>
// kernel: tpu_custom_call.1
= control target key start
LH: loop header
LB: loop body
LE: loop exit
PB: predicated region body
PF: predicated region fallthrough
CT: control target
= control target key end

     0   :  { %s3045_s16 = smov [#allocation6]   ;;  %s3705_s0 = inlined_call_operand.vmem [shape: s32[2], index: 0, kind: input, shape index: {}]   ;;  %s3706_s1 = inlined_call_operand.vmem [shape: f32[2,8,128], index: 1, kind: input, shape index: {}]   ;;  %s3707_s2 = inlined_call_operand.vmem [shape: f32[2,16,128], index: 2, kind: input, shape index: {}]   ;;  %s3708_s3 = inlined_call_operand.vmem [shape: bf16[32,8], index: 3, kind: input, shape index: {}]   ;;  %s3709_s4 = inlined_call_operand.vmem [shape: f32[32,1], index: 4, kind: input, shape index: {}]   ;;  %s3710_s5 = inlined_call_operand.vmem [shape: bf16[2,64,160], index: 5, kind: input, shape index: {}]   ;;  %s3711_s6 = inlined_call_operand.vmem [shape: f32[2,64,1], index: 6, kind: input, shape index: {}]   ;;  %s3712_s7 = inlined_call_operand.vmem [shape: bf16[2,64,32], index: 7, kind: input, shape index: {}]   ;;  %s3713_s8 = inlined_call_operand.vmem [shape: f32[2,64,1], index: 8, kind: input, shape index: {}]   ;;  %s3714_s9 = inlined_call_operand.vmem [shape: bf16[32,32], index: 9, kind: input, shape index: {}]   ;;  %s3715_s10 = inlined_call_operand.vmem [shape: f32[32,1], index: 10, kind: input, shape index: {}]   ;;  %s3716_s11 = inlined_call_operand.hbm [shape: f32[2,16,128], index: 11, kind: output, shape index: {0}]   ;;  %s3717_s12 = inlined_call_operand.hbm [shape: f32[2,16,128], index: 12, kind: output, shape index: {1}]   ;;  %s3718_s13 = inlined_call_operand.hbm [shape: f32[2,16,128], index: 13, kind: output, shape index: {2}]   ;;  %s3719_s14 = inlined_call_operand.hbm [shape: f32[2,1,128], index: 14, kind: output, shape index: {3}]  }
   0x1   :  { %3740 = sst [smem:[#allocation29_spill]] %s3706_s1  ;;  %s21_s15 = sshll.u32 %s3705_s0, 4  ;;  %s22_s15 = int_to_ptr.vmem [resolvable:$true] %s21_s15 }
   0x2   :  { %3741 = sst [smem:[#allocation30_spill]] %s3707_s2 }
   0x3   :  { %3742 = sst [smem:[#allocation31_spill]] %s3708_s3 }
   0x4   :  { %3743 = sst [smem:[#allocation32_spill]] %s3714_s9 }
   0x5   :  { %3744 = sst [smem:[#allocation33_spill]] %s3716_s11 }
   0x6   :  { %3745 = sst [smem:[#allocation34_spill]] %s3717_s12 }
   0x7   :  { %3746 = sst [smem:[#allocation35_spill]] %s3718_s13 }
   0x8   :  { %3747 = sst [smem:[#allocation36_spill]] %s3719_s14 }
   0x9   :  { %24 = dma.vmem_to_smem %s22_s15, 16, %s3045_s16, [#allocation5] }
   0xa   :  { %2919 = dma.done.wait [#allocation5], 16 }
   0xb   :  { %2920 = vsyncadd [#allocation5], 4294967280 }
   0xc   :  { %27 = sfence }
   0xd   :  { %28 = vsyncpa [#allocation8], 0 }
   0xe   :  { %30 = vsyncpa [#allocation8 + $0x1], 0 }
   0xf   :  { %31 = vsyncpa [#allocation10], 0 }
  0x10   :  { %33 = vsyncpa [#allocation10 + $0x1], 0 }
  0x11   :  { %34 = vsyncpa [#allocation13], 0 }
  0x12   :  { %36 = vsyncpa [#allocation13 + $0x1], 0  ;;  %s3140_s17 = smov 0   ;;  %s3142_s18 = smov 0  }
  0x13   :  { %s3144_s19 = smov 0   ;;  %s3146_s20 = smov 0  }
  0x14   :  { %s3148_s0 = smov 0   ;;  %s3150_s21 = smov 0  }
  0x15   :  { %s3152_s22 = smov 0   ;;  %s3154_s23 = smov 0  }
  0x16 LB: > { %3748 = sst [smem:[#allocation18_spill]] %s2935_s17  ;;  %s3721_s24 = sadd.s32 4294967295, %s2963_s23   ;;  %s2963_s23 = sphi %s3154_s23, %s42_s23   ;;  %s2959_s22 = sphi %s3152_s22, %s3787_s22   ;;  %s2955_s21 = sphi %s3150_s21, %s3786_s21   ;;  %s2951_s0 = sphi %s3148_s0, %s3785_s0   ;;  %s2947_s20 = sphi %s3146_s20, %s3784_s20   ;;  %s2943_s19 = sphi %s3144_s19, %s3783_s19   ;;  %s2939_s18 = sphi %s3142_s18, %s3782_s18   ;;  %s2935_s17 = sphi %s3140_s17, %s3781_s17  }
  0x17   : > { %3749 = sst [smem:[#allocation19_spill]] %s2939_s18  ;;  %s3720_s25 = sadd.s32 4294967294, %s2963_s23  }
  0x18   : > { %3750 = sst [smem:[#allocation20_spill]] %s2943_s19  ;;  %s51_s26 = sadd.s32 1, %s2955_s21 }
  0x19   : > { %3751 = sst [smem:[#allocation21_spill]] %s2955_s21  ;;  %p52_p0 = scmp.ge.s32.totalorder %s51_s26, 2 }
  0x1a   : > { %3752 = sst [smem:[#allocation22_spill]] %s2959_s22  ;;  %s54_s27 = sadd.s32 1, %s2959_s22 }
  0x1b   : > { %3753 = sst [smem:[#allocation23_spill]] %s2963_s23  ;;  %p311_p1 = scmp.ne.s32.totalorder %s2943_s19, %s2939_s18 }
  0x1c   : > { %p312_p2 = scmp.eq.s32.totalorder %s3721_s24, 3  ;;  %s3789_s26 = smov (%p52_p0, %s51_s26), 0 }
  0x1d   : > { %3754 = sst [smem:[#allocation24_spill]] %s3789_s26  ;;  %s3791_s27 = smov (!%p52_p0, %s54_s27), %s2959_s22 }
  0x1e   : > { %p3191_p3 = por %p312_p2, %p311_p1  ;;  %p317_p4 = scmp.ne.s32.totalorder %s2939_s18, %s2935_s17 }
  0x1f   : > { %p56_p5 = scmp.ge.s32.totalorder %s3791_s27, 2  ;;  %p318_p6 = scmp.eq.s32.totalorder %s3720_s25, 3 }
  0x20   : > { %s3755_s28 = scalar_select %p3191_p3, 1, 0 }
  0x21   : > { %p2093_p7 = scmp.ge.s32.totalorder %s2963_s23, 1  ;;  %p473_p8 = scmp.lt.s32.totalorder %s2963_s23, 5 }
  0x22   : > { %3756 = sst [smem:[#allocation25_spill]] %s3755_s28  ;;  %s3793_s27 = smov (%p56_p5, %s3791_s27), 0 }
  0x23   : > { %3757 = sst [smem:[#allocation26_spill]] %s3793_s27  ;;  %p3203_p9 = por %p318_p6, %p317_p4 }
  0x24   : > { %p474_p10 = pnand %p2093_p7, %p473_p8  ;;  %s298_s30 = ssub.s32 %s2959_s22, %s3793_s27 }
  0x25   : > { %s3758_s29 = scalar_select %p3203_p9, 1, 0 }
  0x26   : > { %s301_s15 = sadd.s32 1, %s2943_s19  ;;  %p299_p11 = scmp.eq.s32.totalorder %s298_s30, 0 }
  0x27   : > { %3759 = sst [smem:[#allocation27_spill]] %s3758_s29  ;;  %477 = sbr.rel (%p474_p10) target bundleno = 1485 (0x5cd), region = 60 }
  0x28   : > { %s3211_s16 = scalar_select %p299_p11, %s2943_s19, %s301_s15  }
  0x29   : > { %s3214_s25 = sand.u32 (!%p474_p10), 1, %s2939_s18   ;;  %p555_p12 = scmp.lt.s32.totalorder (!%p474_p10), %s2951_s0, 1 }
  0x2a   : > { %3760 = sst [smem:[#allocation28_spill]] %s3211_s16  ;;  %s2094_s24 = sshll.u32 (!%p474_p10), %s3214_s25, 4 }
  0x2b   : > { %p564_p13 = scmp.lt.s32.totalorder (!%p474_p10), %s2947_s20, 1  ;;  %s3761_s1 = sld [smem:[#allocation29_spill]] (!%p474_p10) }
  0x2c   : > { %s556_s26 = scalar_select %p555_p12, %s2951_s0, 1 }
  0x2d   : > { %s565_s27 = scalar_select %p564_p13, %s2947_s20, 1 }
  0x2e   : > { %s2097_s30 = sshll.u32 %s556_s26, 3  ;;  %s2208_s15 = sshll.u32 %s556_s26, 4 }
  0x2f   : > { %s3762_s2 = sld [smem:[#allocation30_spill]]  ;;  %s2209_s18 = sshll.u32 %s565_s27, 6 }
  0x30   : > { %s2211_s14 = sshll.u32 %s565_s27, 5  ;;  %s3234_s12 = scalar_lea.vmem %s3710_s5, %s2209_s18 }
  0x31   : > { %s558_s16 = scalar_lea.vmem %s3761_s1, %s2097_s30  ;;  %s3239_s26 = scalar_lea.vmem %s3711_s6, %s2209_s18 }
  0x32   : > { %s3244_s22 = scalar_lea.vmem %s3712_s7, %s2211_s14  ;;  %s3249_s30 = scalar_lea.vmem %s3713_s8, %s2209_s18 }
  0x33   : > { %s3251_s27 = scalar_lea.vmem [#allocation7], %s2094_s24  ;;  %s3253_s11 = scalar_lea.vmem [#allocation9], %s2094_s24 }
  0x34   : > { %s3255_s13 = scalar_lea.vmem [#allocation11], %s2094_s24  ;;  %p2108_p0 = scmp.ne.s32.totalorder %s2947_s20, 0 }
  0x35   : > { %s3229_s17 = scalar_lea.vmem %s3762_s2, %s2208_s15  ;;  %s3738_s15 = scalar_lea.vmem [#allocation12], %s3214_s25 }
  0x36   : > { %588 = sbr.rel (%p2108_p0) target bundleno = 206 (0xce), region = 64  ;;  %s3763_s3 = sld [smem:[#allocation31_spill]] (!%p2108_p0) }
  0x37   : > { %s589_s18 = sld [smem:[#allocation6 + %s2951_s0]] (!%p2108_p0) }
  0x3b   : > { %v614_v0 = vld [vmem:[%s558_s16] sm:$0xff]  ;;  %vm657_vm0 = vcmask 1043456   ;;  %v3046_v2 = vmov 0   ;;  %v618_v3 = vld [vmem:[%s3709_s4 + $0x10] sm:$0xff]  ;;  %vm650_vm1 = vcmask 64512   ;;  %v619_v8 = vld [vmem:[%s3709_s4 + $0x18] sm:$0xff]  ;;  %v592_v10 = vlaneseq }
  0x3c   : > { %v615_v1 = vpack.c.bf16 %v614_v0, %v614_v0  ;;  %2509 = vset.pattern.permute.xlu1 %v3046_v2  ;;  %2508 = vset.pattern.permute.xlu0 %v3046_v2  ;;  %v616_v4 = vld [vmem:[%s3709_s4] sm:$0xff]  ;;  %v2214_v7 = vld [vmem:[%s3763_s3 + $0x8] sm:$0xff]  ;;  %vm600_vm2 = vcmask 1048544   ;;  %v3047_v12 = vmov 0.0   ;;  %vm605_vm3 = vcmask 31744  }
  0x3d   : > { %632 = vperm.xlu1 %2509, %v618_v3   ;;  %622 = vperm.xlu0 %2508, %v616_v4   ;;  %v2213_v6 = vld [vmem:[%s3763_s3] sm:$0xff]  ;;  %v617_v9 = vld [vmem:[%s3709_s4 + $0x8] sm:$0xff]  ;;  %p590_p1 = scmp.lt.s32.totalorder %s589_s18, 16  ;;  %601 = vst.msk [vmem:[#allocation2] sm:$0xff] %vm600_vm2, %v3047_v12  ;;  %v593_v13 = vand.u32 127, %v592_v10 }
  0x3e   : > { %v659_v5 = vsel %vm657_vm0, %v615_v1, 0  ;;  %602 = vst.msk [vmem:[#allocation2 + $0x18] sm:$0xff] %vm600_vm2, %v3047_v12 }
  0x3f   : > { %668 = vmatpush.bf16.msra.mxu0 %v659_v5  ;;  %2234 = vmatpush.bf16.msra.mxu1 %v659_v5  ;;  %s3795_s18 = smov (!%p590_p1, %s589_s18), 16  ;;  %603 = vst.msk [vmem:[#allocation2 + $0x30] sm:$0xff] %vm600_vm2, %v3047_v12 }
  0x40   : > { %v594_v11 = vstv %s3795_s18  ;;  %604 = vst.msk [vmem:[#allocation2 + $0x48] sm:$0xff] %vm600_vm2, %v3047_v12 }
  0x41   : > { %vm595_vm4 = vcmp.lt.s32.totalorder %v593_v13, %v594_v11  ;;  %606 = vst.msk [vmem:[#allocation2 + $0x10] sm:$0xff] %vm605_vm3, %v3047_v12 }
  0x42   : > { %2118 = vmatmul.msk.bf16.vlgmr.msra.gmra.mxu0 %vm650_vm1, %v2213_v6  ;;  %2119 = vmatmul.msk.bf16.vlgmr.msra.gmra.mxu1 %vm650_vm1, %v2214_v7  ;;  %v2109_v14 = vsel %vm595_vm4, 1.0, %v3047_v12  ;;  %607 = vst.msk [vmem:[#allocation2 + $0x28] sm:$0xff] %vm605_vm3, %v3047_v12 }
  0x43   : > { %598 = vst [vmem:[#allocation4] sm:$0x1] %v2109_v14 }
  0x44   : > { %599 = vst [vmem:[%s3738_s15] sm:$0x1] %v2109_v14 }
  0x45   : > { %637 = vperm.xlu1 %2509, %v619_v8   ;;  %627 = vperm.xlu0 %2508, %v617_v9   ;;  %608 = vst.msk [vmem:[#allocation2 + $0x40] sm:$0xff] %vm605_vm3, %v3047_v12 }
  0x46   : > { %609 = vst.msk [vmem:[#allocation2 + $0x58] sm:$0xff] %vm605_vm3, %v3047_v12 }
  0x47   : > { %688 = vst [vmem:[#allocation3 + $0x10] sm:$0xff] %v3047_v12 }
  0x48   : > { %689 = vst [vmem:[#allocation3] sm:$0xff] %v3047_v12 }
  0x49   : > { %690 = vst [vmem:[#allocation3 + $0x18] sm:$0xff] %v3047_v12 }
  0x4a   : > { %691 = vst [vmem:[#allocation3 + $0x8] sm:$0xff] %v3047_v12 }
  0xaf   : > { %v633_v15 = vpop.permute.xlu1 %632  ;;  %v623_v16 = vpop.permute.xlu0 %622 }
  0xb7   : > { %v638_v23 = vpop.permute.xlu1 %637  ;;  %v628_v24 = vpop.permute.xlu0 %627 }
  0xbf   : > { %v670_v17 = vpop.f32.mrf.mxu0  ;;  %v675_v18 = vpop.f32.mrf.mxu1 }
  0xc0   : > { %v671_v19 = vadd.f32 %v670_v17, %v623_v16  ;;  %v676_v20 = vadd.f32 %v675_v18, %v633_v15 }
  0xc2   : > { %v680_v21 = vmul.f32 %v2109_v14, %v671_v19  ;;  %v682_v22 = vmul.f32 %v2109_v14, %v676_v20 }
  0xc4   : > { %684 = vst [vmem:[#allocation2 + $0x8] sm:$0xff] %v680_v21 }
  0xc5   : > { %686 = vst [vmem:[#allocation2 + $0x38] sm:$0xff] %v682_v22 }
  0xc7   : > { %v672_v25 = vpop.f32.mrf.mxu0  ;;  %v677_v26 = vpop.f32.mrf.mxu1 }
  0xc8   : > { %v673_v27 = vadd.f32 %v672_v25, %v628_v24  ;;  %v678_v28 = vadd.f32 %v677_v26, %v638_v23 }
  0xca   : > { %v681_v29 = vmul.f32 %v2109_v14, %v673_v27  ;;  %v683_v30 = vmul.f32 %v2109_v14, %v678_v28 }
  0xcc   : > { %685 = vst [vmem:[#allocation2 + $0x20] sm:$0xff] %v681_v29 }
  0xcd   : > { %687 = vst [vmem:[#allocation2 + $0x50] sm:$0xff] %v683_v30 }
  0xce PF: > { %v3280_v31 = vld [vmem:[#allocation4] sm:$0x1]  ;;  %p693_p2 = scmp.gt.s32.totalorder %s2947_s20, 0  ;;  %v3290_v32 = vmov 0   ;;  %v3292_v33 = vmov 0   ;;  %v3294_v34 = vmov 0  }
  0xcf   : > { %v3296_v35 = vmov 0   ;;  %v3298_v36 = vmov 0   ;;  %v3300_v37 = vmov 0   ;;  %v3302_v38 = vmov 0  }
  0xd0   : > { %s694_s23 = scalar_select %p693_p2, %s2947_s20, 0  ;;  %v3304_v39 = vmov 0   ;;  %v3306_v40 = vmov 0   ;;  %v3308_v41 = vmov 0  }
  0xd2   : > { %s3797_s23 = smov (!%p564_p13, %s694_s23), 1 }
  0xd3   : > { %p697_p4 = scmp.ne.s32.totalorder %s3797_s23, 0  ;;  %p2125_p5 = scmp.eq.s32.totalorder %s3797_s23, 0 }
  0xd4   : > { %s3048_s24 = smov (!%p2125_p5), 126   ;;  %s3049_s28 = smov (!%p2125_p5), 124  }
  0xd5   : > { %700 = sbr.rel (%p2125_p5) target bundleno = 503 (0x1f7), region = 68  ;;  %s3050_s16 = smov (!%p2125_p5), 122  }
  0xd6   : > { %s3051_s21 = smov (!%p2125_p5), 120   ;;  %s3052_s19 = smov (!%p2125_p5), 4  }
  0xda   : > { %v705_v42 = vld [vmem:[#allocation2 + $0x30] sm:$0xff]  ;;  %v706_v43 = vld [vmem:[#allocation2 + $0x38] sm:$0xff]  ;;  %v702_v44 = vld [vmem:[#allocation2 + $0x8] sm:$0xff]  ;;  %vm737_vm5 = vcmask 1031168   ;;  %vm782_vm6 = vcmask 998400   ;;  %vm811_vm7 = vcmask 982016  }
  0xdb   : > { %v2520_v45 = vpack.i.bf16 %v706_v43, %v705_v42  ;;  %v704_v46 = vld [vmem:[#allocation2 + $0x20] sm:$0xff]  ;;  %v707_v51 = vld [vmem:[#allocation2 + $0x48] sm:$0xff]  ;;  %v708_v52 = vld [vmem:[#allocation2 + $0x50] sm:$0xff]  ;;  %v826_v1 = vpack.c.bf16 %v706_v43, %v705_v42  ;;  %vm964_vm8 = vcmask 31744  }
  0xdc   : > { %v701_v47 = vld [vmem:[#allocation2] sm:$0xff]  ;;  %v2530_v48 = vpack.i.bf16 %v704_v46, %v702_v44  ;;  %v703_v53 = vld [vmem:[#allocation2 + $0x18] sm:$0xff]  ;;  %v2525_v54 = vpack.i.bf16 %v708_v52, %v707_v51  ;;  %v2535_v56 = vpack.i.bf16 %v708_v52, %v706_v43  ;;  %v710_v57 = vld [vmem:[#allocation2 + $0x28] sm:$0xff]  ;;  %v827_v2 = vpack.c.bf16 %v708_v52, %v707_v51 }
  0xdd   : > { %v2510_v49 = vpack.i.bf16 %v702_v44, %v701_v47  ;;  %v824_v50 = vpack.c.bf16 %v702_v44, %v701_v47  ;;  %2521 = vrot.lane.b32.xlu1 %v2520_v45, %s3048_s24  ;;  %v2515_v55 = vpack.i.bf16 %v704_v46, %v703_v53  ;;  %v709_v58 = vld [vmem:[#allocation2 + $0x10] sm:$0xff]  ;;  %v2545_v59 = vpack.i.bf16 %v710_v57, %v704_v46  ;;  %v711_v60 = vld [vmem:[#allocation2 + $0x40] sm:$0xff]  ;;  %v712_v63 = vld [vmem:[#allocation2 + $0x58] sm:$0xff] }
  0xde   : > { %2531 = vrot.lane.b32.xlu2 %v2530_v48, %s3049_s28  ;;  %v2540_v61 = vpack.i.bf16 %v709_v58, %v702_v44  ;;  %v2550_v62 = vpack.i.bf16 %v711_v60, %v706_v43  ;;  %v2555_v0 = vpack.i.bf16 %v712_v63, %v708_v52  ;;  %v868_v3 = vunpack.c.l.b16 %v826_v1 }
  0xdf   : > { %2511 = vrot.lane.b32.xlu0 %v2510_v49, %s3048_s24  ;;  %v870_v4 = vunpack.c.l.b16 %v827_v2  ;;  %v825_v6 = vpack.c.bf16 %v704_v46, %v703_v53  ;;  %v864_v7 = vunpack.c.l.b16 %v824_v50  ;;  %v869_v10 = vunpack.c.h.b16 %v826_v1 }
  0xe0   : > { %v871_v11 = vunpack.c.h.b16 %v827_v2  ;;  %v865_v13 = vunpack.c.h.b16 %v824_v50 }
  0xe1   : > { %v906_v5 = vpack.c.b16 %v870_v4, %v868_v3  ;;  %v866_v8 = vunpack.c.l.b16 %v825_v6  ;;  %v867_v14 = vunpack.c.h.b16 %v825_v6 }
  0xe2   : > { %v907_v12 = vpack.c.b16 %v871_v11, %v869_v10 }
  0xe3   : > { %v904_v9 = vpack.c.b16 %v866_v8, %v864_v7  ;;  %v905_v15 = vpack.c.b16 %v867_v14, %v865_v13 }
  0xe5   : > { %2526 = vrot.lane.b32.xlu1 %v2525_v54, %s3048_s24 }
  0xe6   : > { %2536 = vrot.lane.b32.xlu2 %v2535_v56, %s3049_s28 }
  0xe7   : > { %2516 = vrot.lane.b32.xlu0 %v2515_v55, %s3048_s24 }
  0xed   : > { %2546 = vrot.lane.b32.xlu1 %v2545_v59, %s3050_s16 }
  0xee   : > { %2551 = vrot.lane.b32.xlu2 %v2550_v62, %s3050_s16 }
  0xef   : > { %2541 = vrot.lane.b32.xlu0 %v2540_v61, %s3050_s16 }
  0xf5   : > { %2561 = vrot.lane.b32.xlu1 %v2540_v61, %s3051_s21 }
  0xf6   : > { %2566 = vrot.lane.b32.xlu2 %v2545_v59, %s3051_s21 }
  0xf7   : > { %2556 = vrot.lane.b32.xlu0 %v2555_v0, %s3050_s16 }
  0xfd   : > { %2576 = vrot.lane.b32.xlu1 %v2555_v0, %s3051_s21 }
  0xfe   : > { %924 = vrot.lane.b32.xlu2 %v904_v9, %s3052_s19 }
  0xff   : > { %2571 = vrot.lane.b32.xlu0 %v2550_v62, %s3051_s21 }
 0x105   : > { %928 = vrot.lane.b32.xlu1 %v906_v5, %s3052_s19 }
 0x106   : > { %930 = vrot.lane.b32.xlu2 %v907_v12, %s3052_s19 }
 0x107   : > { %926 = vrot.lane.b32.xlu0 %v905_v15, %s3052_s19 }
 0x138   : > { %v2532_v16 = vpop.permute.xlu2 %2531 }
 0x139   : > { %v2534_v17 = vunpack.i.h.bf16 %v2532_v16  ;;  %v2533_v18 = vunpack.i.l.bf16 %v2532_v16 }
 0x13b   : > { %v833_v19 = vpack.c.bf16 %v2534_v17, %v2534_v17  ;;  %v832_v20 = vpack.c.bf16 %v2533_v18, %v2533_v18 }
 0x13d   : > { %v882_v21 = vunpack.c.l.b16 %v833_v19  ;;  %v883_v22 = vunpack.c.h.b16 %v833_v19  ;;  %v880_v23 = vunpack.c.l.b16 %v832_v20  ;;  %v881_v24 = vunpack.c.h.b16 %v832_v20 }
 0x13f   : > { %v912_v25 = vpack.c.b16 %v882_v21, %v880_v23  ;;  %v913_v26 = vpack.c.b16 %v883_v22, %v881_v24 }
 0x140   : > { %v2537_v27 = vpop.permute.xlu2 %2536 }
 0x141   : > { %940 = vrot.lane.b32.xlu1 %v912_v25, %s3052_s19  ;;  %v2539_v28 = vunpack.i.h.bf16 %v2537_v27  ;;  %v2538_v29 = vunpack.i.l.bf16 %v2537_v27  ;;  %942 = vrot.lane.b32.xlu2 %v913_v26, %s3052_s19 }
 0x143   : > { %v835_v30 = vpack.c.bf16 %v2539_v28, %v2539_v28  ;;  %v834_v32 = vpack.c.bf16 %v2538_v29, %v2538_v29 }
 0x145   : > { %v886_v33 = vunpack.c.l.b16 %v835_v30  ;;  %v887_v34 = vunpack.c.h.b16 %v835_v30  ;;  %v884_v35 = vunpack.c.l.b16 %v834_v32  ;;  %v885_v36 = vunpack.c.h.b16 %v834_v32 }
 0x147   : > { %v915_v37 = vpack.c.b16 %v887_v34, %v885_v36  ;;  %v914_v38 = vpack.c.b16 %v886_v33, %v884_v35 }
 0x148   : > { %v2552_v54 = vpop.permute.xlu2 %2551 }
 0x149   : > { %946 = vrot.lane.b32.xlu1 %v915_v37, %s3052_s19  ;;  %944 = vrot.lane.b32.xlu0 %v914_v38, %s3052_s19  ;;  %v2554_v4 = vunpack.i.h.bf16 %v2552_v54  ;;  %v2553_v5 = vunpack.i.l.bf16 %v2552_v54 }
 0x14b   : > { %v785_v20 = vsel %vm782_vm6, %v2553_v5, %v2554_v4 }
 0x14c   : > { %v838_v25 = vpack.c.bf16 %v785_v20, %v2553_v5 }
 0x14f   : > { %v2522_v39 = vpop.permute.xlu1 %2521 }
 0x150   : > { %v2524_v40 = vunpack.i.h.bf16 %v2522_v39  ;;  %v2523_v41 = vunpack.i.l.bf16 %v2522_v39  ;;  %v2567_v16 = vpop.permute.xlu2 %2566 }
 0x151   : > { %v2512_v42 = vpop.permute.xlu0 %2511  ;;  %v2569_v23 = vunpack.i.h.bf16 %v2567_v16  ;;  %v2568_v24 = vunpack.i.l.bf16 %v2567_v16 }
 0x152   : > { %v2514_v43 = vunpack.i.h.bf16 %v2512_v42  ;;  %v2513_v44 = vunpack.i.l.bf16 %v2512_v42  ;;  %v740_v45 = vsel %vm737_vm5, %v2523_v41, %v2524_v40  ;;  %v893_v41 = vunpack.c.h.b16 %v838_v25 }
 0x153   : > { %v830_v46 = vpack.c.bf16 %v2524_v40, %v740_v45  ;;  %v813_v37 = vsel %vm811_vm7, %v2568_v24, %v2569_v23  ;;  %v892_v40 = vunpack.c.l.b16 %v838_v25 }
 0x154   : > { %v738_v47 = vsel %vm737_vm5, %v2513_v44, %v2514_v43 }
 0x155   : > { %v828_v55 = vpack.c.bf16 %v2514_v43, %v738_v47  ;;  %v876_v57 = vunpack.c.l.b16 %v830_v46  ;;  %v877_v17 = vunpack.c.h.b16 %v830_v46  ;;  %v841_v43 = vpack.c.bf16 %v813_v37, %v2568_v24 }
 0x157   : > { %v2527_v48 = vpop.permute.xlu1 %2526  ;;  %v872_v62 = vunpack.c.l.b16 %v828_v55  ;;  %v873_v63 = vunpack.c.h.b16 %v828_v55  ;;  %v898_v54 = vunpack.c.l.b16 %v841_v43 }
 0x158   : > { %v2529_v49 = vunpack.i.h.bf16 %v2527_v48  ;;  %v2528_v50 = vunpack.i.l.bf16 %v2527_v48 }
 0x159   : > { %v2517_v51 = vpop.permute.xlu0 %2516 }
 0x15a   : > { %v2519_v52 = vunpack.i.h.bf16 %v2517_v51  ;;  %v2518_v53 = vunpack.i.l.bf16 %v2517_v51  ;;  %v741_v56 = vsel %vm737_vm5, %v2528_v50, %v2529_v49 }
 0x15b   : > { %v831_v58 = vpack.c.bf16 %v2529_v49, %v741_v56 }
 0x15c   : > { %v739_v59 = vsel %vm737_vm5, %v2518_v53, %v2519_v52 }
 0x15d   : > { %v829_v60 = vpack.c.bf16 %v2519_v52, %v739_v59  ;;  %v878_v61 = vunpack.c.l.b16 %v831_v58  ;;  %v879_v18 = vunpack.c.h.b16 %v831_v58  ;;  %v899_v59 = vunpack.c.h.b16 %v841_v43 }
 0x15f   : > { %v874_v0 = vunpack.c.l.b16 %v829_v60  ;;  %v875_v1 = vunpack.c.h.b16 %v829_v60  ;;  %v2547_v2 = vpop.permute.xlu1 %2546  ;;  %v910_v3 = vpack.c.b16 %v878_v61, %v876_v57  ;;  %v911_v28 = vpack.c.b16 %v879_v18, %v877_v17 }
 0x160   : > { %v2549_v6 = vunpack.i.h.bf16 %v2547_v2  ;;  %v2548_v7 = vunpack.i.l.bf16 %v2547_v2 }
 0x161   : > { %v2542_v8 = vpop.permute.xlu0 %2541  ;;  %v909_v9 = vpack.c.b16 %v875_v1, %v873_v63  ;;  %v908_v10 = vpack.c.b16 %v874_v0, %v872_v62  ;;  %936 = vrot.lane.b32.xlu2 %v910_v3, %s3052_s19 }
 0x162   : > { %v2544_v11 = vunpack.i.h.bf16 %v2542_v8  ;;  %v2543_v12 = vunpack.i.l.bf16 %v2542_v8  ;;  %v784_v13 = vsel %vm782_vm6, %v2548_v7, %v2549_v6  ;;  %v925_v8 = vpop.permute.xlu2 %924 }
 0x163   : > { %934 = vrot.lane.b32.xlu1 %v909_v9, %s3052_s19  ;;  %932 = vrot.lane.b32.xlu0 %v908_v10, %s3052_s19  ;;  %v837_v14 = vpack.c.bf16 %v784_v13, %v2548_v7 }
 0x164   : > { %v783_v15 = vsel %vm782_vm6, %v2543_v12, %v2544_v11 }
 0x165   : > { %v836_v19 = vpack.c.bf16 %v783_v15, %v2543_v12  ;;  %v890_v21 = vunpack.c.l.b16 %v837_v14  ;;  %v891_v35 = vunpack.c.h.b16 %v837_v14 }
 0x167   : > { %v888_v22 = vunpack.c.l.b16 %v836_v19  ;;  %v2562_v26 = vpop.permute.xlu1 %2561  ;;  %v889_v36 = vunpack.c.h.b16 %v836_v19 }
 0x168   : > { %v2564_v30 = vunpack.i.h.bf16 %v2562_v26  ;;  %v2563_v32 = vunpack.i.l.bf16 %v2562_v26 }
 0x169   : > { %v2557_v27 = vpop.permute.xlu0 %2556  ;;  %v916_v29 = vpack.c.b16 %v890_v21, %v888_v22  ;;  %v917_v47 = vpack.c.b16 %v891_v35, %v889_v36 }
 0x16a   : > { %v2559_v33 = vunpack.i.h.bf16 %v2557_v27  ;;  %v2558_v34 = vunpack.i.l.bf16 %v2557_v27  ;;  %v812_v39 = vsel %vm811_vm7, %v2563_v32, %v2564_v30  ;;  %v931_v9 = vpop.permute.xlu2 %930 }
 0x16b   : > { %938 = vrot.lane.b32.xlu0 %v911_v28, %s3052_s19  ;;  %948 = vrot.lane.b32.xlu2 %v916_v29, %s3052_s19  ;;  %v840_v46 = vpack.c.bf16 %v812_v39, %v2563_v32 }
 0x16c   : > { %v786_v38 = vsel %vm782_vm6, %v2558_v34, %v2559_v33 }
 0x16d   : > { %v839_v42 = vpack.c.bf16 %v786_v38, %v2558_v34  ;;  %v896_v57 = vunpack.c.l.b16 %v840_v46  ;;  %v897_v58 = vunpack.c.h.b16 %v840_v46 }
 0x16f   : > { %v894_v44 = vunpack.c.l.b16 %v839_v42  ;;  %v895_v45 = vunpack.c.h.b16 %v839_v42  ;;  %v2577_v48 = vpop.permute.xlu1 %2576  ;;  %v921_v2 = vpack.c.b16 %v899_v59, %v897_v58  ;;  %v920_v3 = vpack.c.b16 %v898_v54, %v896_v57 }
 0x170   : > { %v2579_v51 = vunpack.i.h.bf16 %v2577_v48  ;;  %v2578_v52 = vunpack.i.l.bf16 %v2577_v48 }
 0x171   : > { %v918_v49 = vpack.c.b16 %v894_v44, %v892_v40  ;;  %v919_v50 = vpack.c.b16 %v895_v45, %v893_v41  ;;  %v2572_v53 = vpop.permute.xlu0 %2571 }
 0x172   : > { %v2574_v55 = vunpack.i.h.bf16 %v2572_v53  ;;  %v2573_v56 = vunpack.i.l.bf16 %v2572_v53  ;;  %v815_v60 = vsel %vm811_vm7, %v2578_v52, %v2579_v51 }
 0x173   : > { %952 = vrot.lane.b32.xlu1 %v918_v49, %s3052_s19  ;;  %950 = vrot.lane.b32.xlu0 %v917_v47, %s3052_s19  ;;  %v843_v61 = vpack.c.bf16 %v815_v60, %v2578_v52 }
 0x174   : > { %954 = vrot.lane.b32.xlu2 %v919_v50, %s3052_s19  ;;  %v814_v62 = vsel %vm811_vm7, %v2573_v56, %v2574_v55 }
 0x175   : > { %v842_v63 = vpack.c.bf16 %v814_v62, %v2573_v56  ;;  %v902_v0 = vunpack.c.l.b16 %v843_v61  ;;  %v903_v5 = vunpack.c.h.b16 %v843_v61 }
 0x177   : > { %v900_v1 = vunpack.c.l.b16 %v842_v63  ;;  %v901_v6 = vunpack.c.h.b16 %v842_v63  ;;  %v929_v10 = vpop.permute.xlu1 %928 }
 0x178   : > { %v966_v40 = vsel %vm964_vm8, %v929_v10, %v931_v9  }
 0x179   : > { %v922_v4 = vpack.c.b16 %v902_v0, %v900_v1  ;;  %v923_v7 = vpack.c.b16 %v903_v5, %v901_v6  ;;  %v927_v11 = vpop.permute.xlu0 %926 }
 0x17a   : > { %v965_v41 = vsel %vm964_vm8, %v925_v8, %v927_v11  }
 0x17b   : > { %958 = vrot.lane.b32.xlu1 %v921_v2, %s3052_s19  ;;  %956 = vrot.lane.b32.xlu0 %v920_v3, %s3052_s19 }
 0x17c   : > { %960 = vrot.lane.b32.xlu2 %v922_v4, %s3052_s19 }
 0x183   : > { %962 = vrot.lane.b32.xlu0 %v923_v7, %s3052_s19 }
 0x19b   : > { %v943_v12 = vpop.permute.xlu2 %942 }
 0x1b3   : > { %v941_v13 = vpop.permute.xlu1 %940 }
 0x1b4   : > { %v969_v37 = vsel %vm964_vm8, %v941_v13, %v943_v12  }
 0x1bb   : > { %v947_v14 = vpop.permute.xlu1 %946  ;;  %v945_v15 = vpop.permute.xlu0 %944 }
 0x1bc   : > { %v970_v36 = vsel %vm964_vm8, %v945_v15, %v947_v14   ;;  %v937_v16 = vpop.permute.xlu2 %936 }
 0x1c5   : > { %v949_v19 = vpop.permute.xlu2 %948 }
 0x1ce   : > { %v955_v21 = vpop.permute.xlu2 %954 }
 0x1d5   : > { %v935_v17 = vpop.permute.xlu1 %934  ;;  %v933_v18 = vpop.permute.xlu0 %932 }
 0x1d6   : > { %v967_v39 = vsel %vm964_vm8, %v933_v18, %v935_v17   ;;  %v961_v26 = vpop.permute.xlu2 %960 }
 0x1dd   : > { %v939_v20 = vpop.permute.xlu0 %938 }
 0x1de   : > { %v968_v38 = vsel %vm964_vm8, %v937_v16, %v939_v20  }
 0x1e5   : > { %v953_v22 = vpop.permute.xlu1 %952  ;;  %v951_v23 = vpop.permute.xlu0 %950 }
 0x1e6   : > { %v972_v34 = vsel %vm964_vm8, %v953_v22, %v955_v21   ;;  %v971_v35 = vsel %vm964_vm8, %v949_v19, %v951_v23  }
 0x1ed   : > { %v959_v24 = vpop.permute.xlu1 %958  ;;  %v957_v25 = vpop.permute.xlu0 %956 }
 0x1ee   : > { %v973_v33 = vsel %vm964_vm8, %v957_v25, %v959_v24  }
 0x1f5   : > { %v963_v27 = vpop.permute.xlu0 %962 }
 0x1f6   : > { %v974_v32 = vsel %vm964_vm8, %v961_v26, %v963_v27  }
 0x1f7 PF: > { %997 = sbr.rel (%p697_p4) target bundleno = 793 (0x319), region = 72  ;;  %s3053_s29 = smov (!%p697_p4), 127   ;;  %v3003_v41 = vphi %v3308_v41, %v965_v41   ;;  %v2999_v40 = vphi %v3306_v40, %v966_v40   ;;  %v2995_v39 = vphi %v3304_v39, %v967_v39   ;;  %v2991_v38 = vphi %v3302_v38, %v968_v38   ;;  %v2987_v37 = vphi %v3300_v37, %v969_v37   ;;  %v2983_v36 = vphi %v3298_v36, %v970_v36   ;;  %v2979_v35 = vphi %v3296_v35, %v971_v35   ;;  %v2975_v34 = vphi %v3294_v34, %v972_v34   ;;  %v2971_v33 = vphi %v3292_v33, %v973_v33   ;;  %v2967_v32 = vphi %v3290_v32, %v974_v32  }
 0x1f8   : > { %s3054_s9 = smov (!%p697_p4), 126   ;;  %s3055_s14 = smov (!%p697_p4), 125  }
 0x1f9   : > { %s3056_s18 = smov (!%p697_p4), 124   ;;  %s3057_s23 = smov (!%p697_p4), 2  }
 0x1fc   : > { %v1002_v28 = vld [vmem:[#allocation2 + $0x30] sm:$0xff]  ;;  %v1003_v29 = vld [vmem:[#allocation2 + $0x38] sm:$0xff]  ;;  %v999_v30 = vld [vmem:[#allocation2 + $0x8] sm:$0xff]  ;;  %vm1034_vm9 = vcmask 1039360   ;;  %vm1079_vm10 = vcmask 1022976   ;;  %vm1108_vm11 = vcmask 1014784  }
 0x1fd   : > { %v2590_v42 = vpack.i.bf16 %v1003_v29, %v1002_v28  ;;  %v1001_v43 = vld [vmem:[#allocation2 + $0x20] sm:$0xff]  ;;  %v1004_v48 = vld [vmem:[#allocation2 + $0x48] sm:$0xff]  ;;  %v1005_v49 = vld [vmem:[#allocation2 + $0x50] sm:$0xff]  ;;  %v1123_v40 = vpack.c.bf16 %v1003_v29, %v1002_v28  ;;  %vm1261_vm12 = vcmask 15360  }
 0x1fe   : > { %v998_v44 = vld [vmem:[#allocation2] sm:$0xff]  ;;  %v2600_v45 = vpack.i.bf16 %v1001_v43, %v999_v30  ;;  %v1000_v50 = vld [vmem:[#allocation2 + $0x18] sm:$0xff]  ;;  %v2595_v51 = vpack.i.bf16 %v1005_v49, %v1004_v48  ;;  %v2605_v53 = vpack.i.bf16 %v1005_v49, %v1003_v29  ;;  %v1007_v32 = vld [vmem:[#allocation2 + $0x28] sm:$0xff]  ;;  %v1124_v41 = vpack.c.bf16 %v1005_v49, %v1004_v48 }
 0x1ff   : > { %v2580_v46 = vpack.i.bf16 %v999_v30, %v998_v44  ;;  %v1121_v47 = vpack.c.bf16 %v999_v30, %v998_v44  ;;  %2591 = vrot.lane.b32.xlu1 %v2590_v42, %s3053_s29  ;;  %v2585_v52 = vpack.i.bf16 %v1001_v43, %v1000_v50  ;;  %v1006_v33 = vld [vmem:[#allocation2 + $0x10] sm:$0xff]  ;;  %v2615_v34 = vpack.i.bf16 %v1007_v32, %v1001_v43  ;;  %v1008_v35 = vld [vmem:[#allocation2 + $0x40] sm:$0xff]  ;;  %v1009_v38 = vld [vmem:[#allocation2 + $0x58] sm:$0xff] }
 0x200   : > { %2601 = vrot.lane.b32.xlu2 %v2600_v45, %s3054_s9  ;;  %v2610_v36 = vpack.i.bf16 %v1006_v33, %v999_v30  ;;  %v2620_v37 = vpack.i.bf16 %v1008_v35, %v1003_v29  ;;  %v2625_v39 = vpack.i.bf16 %v1009_v38, %v1005_v49  ;;  %v1165_v54 = vunpack.c.l.b16 %v1123_v40 }
 0x201   : > { %2581 = vrot.lane.b32.xlu0 %v2580_v46, %s3053_s29  ;;  %v1167_v55 = vunpack.c.l.b16 %v1124_v41  ;;  %v1122_v57 = vpack.c.bf16 %v1001_v43, %v1000_v50  ;;  %v1161_v58 = vunpack.c.l.b16 %v1121_v47  ;;  %v1166_v61 = vunpack.c.h.b16 %v1123_v40 }
 0x202   : > { %v1168_v62 = vunpack.c.h.b16 %v1124_v41  ;;  %v1162_v0 = vunpack.c.h.b16 %v1121_v47 }
 0x203   : > { %v1203_v56 = vpack.c.b16 %v1167_v55, %v1165_v54  ;;  %v1163_v59 = vunpack.c.l.b16 %v1122_v57  ;;  %v1164_v1 = vunpack.c.h.b16 %v1122_v57 }
 0x204   : > { %v1204_v63 = vpack.c.b16 %v1168_v62, %v1166_v61 }
 0x205   : > { %v1201_v60 = vpack.c.b16 %v1163_v59, %v1161_v58  ;;  %v1202_v2 = vpack.c.b16 %v1164_v1, %v1162_v0 }
 0x207   : > { %2596 = vrot.lane.b32.xlu1 %v2595_v51, %s3053_s29 }
 0x208   : > { %2606 = vrot.lane.b32.xlu2 %v2605_v53, %s3054_s9 }
 0x209   : > { %2586 = vrot.lane.b32.xlu0 %v2585_v52, %s3053_s29 }
 0x20f   : > { %2616 = vrot.lane.b32.xlu1 %v2615_v34, %s3055_s14 }
 0x210   : > { %2621 = vrot.lane.b32.xlu2 %v2620_v37, %s3055_s14 }
 0x211   : > { %2611 = vrot.lane.b32.xlu0 %v2610_v36, %s3055_s14 }
 0x217   : > { %2631 = vrot.lane.b32.xlu1 %v2610_v36, %s3056_s18 }
 0x218   : > { %2636 = vrot.lane.b32.xlu2 %v2615_v34, %s3056_s18 }
 0x219   : > { %2626 = vrot.lane.b32.xlu0 %v2625_v39, %s3055_s14 }
 0x21f   : > { %2646 = vrot.lane.b32.xlu1 %v2625_v39, %s3056_s18 }
 0x220   : > { %1221 = vrot.lane.b32.xlu2 %v1201_v60, %s3057_s23 }
 0x221   : > { %2641 = vrot.lane.b32.xlu0 %v2620_v37, %s3056_s18 }
 0x227   : > { %1225 = vrot.lane.b32.xlu1 %v1203_v56, %s3057_s23 }
 0x228   : > { %1227 = vrot.lane.b32.xlu2 %v1204_v63, %s3057_s23 }
 0x229   : > { %1223 = vrot.lane.b32.xlu0 %v1202_v2, %s3057_s23 }
 0x25a   : > { %v2602_v3 = vpop.permute.xlu2 %2601 }
 0x25b   : > { %v2604_v4 = vunpack.i.h.bf16 %v2602_v3  ;;  %v2603_v5 = vunpack.i.l.bf16 %v2602_v3 }
 0x25d   : > { %v1130_v6 = vpack.c.bf16 %v2604_v4, %v2604_v4  ;;  %v1129_v7 = vpack.c.bf16 %v2603_v5, %v2603_v5 }
 0x25f   : > { %v1179_v8 = vunpack.c.l.b16 %v1130_v6  ;;  %v1180_v9 = vunpack.c.h.b16 %v1130_v6  ;;  %v1177_v10 = vunpack.c.l.b16 %v1129_v7  ;;  %v1178_v11 = vunpack.c.h.b16 %v1129_v7 }
 0x261   : > { %v1209_v12 = vpack.c.b16 %v1179_v8, %v1177_v10  ;;  %v1210_v13 = vpack.c.b16 %v1180_v9, %v1178_v11 }
 0x262   : > { %v2607_v14 = vpop.permute.xlu2 %2606 }
 0x263   : > { %1237 = vrot.lane.b32.xlu1 %v1209_v12, %s3057_s23  ;;  %v2609_v15 = vunpack.i.h.bf16 %v2607_v14  ;;  %v2608_v16 = vunpack.i.l.bf16 %v2607_v14  ;;  %1239 = vrot.lane.b32.xlu2 %v1210_v13, %s3057_s23 }
 0x265   : > { %v1132_v17 = vpack.c.bf16 %v2609_v15, %v2609_v15  ;;  %v1131_v18 = vpack.c.bf16 %v2608_v16, %v2608_v16 }
 0x267   : > { %v1183_v19 = vunpack.c.l.b16 %v1132_v17  ;;  %v1184_v20 = vunpack.c.h.b16 %v1132_v17  ;;  %v1181_v21 = vunpack.c.l.b16 %v1131_v18  ;;  %v1182_v22 = vunpack.c.h.b16 %v1131_v18 }
 0x269   : > { %v1212_v23 = vpack.c.b16 %v1184_v20, %v1182_v22  ;;  %v1211_v24 = vpack.c.b16 %v1183_v19, %v1181_v21 }
 0x26a   : > { %v2622_v51 = vpop.permute.xlu2 %2621 }
 0x26b   : > { %1243 = vrot.lane.b32.xlu1 %v1212_v23, %s3057_s23  ;;  %1241 = vrot.lane.b32.xlu0 %v1211_v24, %s3057_s23  ;;  %v2624_v55 = vunpack.i.h.bf16 %v2622_v51  ;;  %v2623_v56 = vunpack.i.l.bf16 %v2622_v51 }
 0x26d   : > { %v1082_v7 = vsel %vm1079_vm10, %v2623_v56, %v2624_v55 }
 0x26e   : > { %v1135_v12 = vpack.c.bf16 %v1082_v7, %v2623_v56 }
 0x271   : > { %v2592_v25 = vpop.permute.xlu1 %2591 }
 0x272   : > { %v2594_v26 = vunpack.i.h.bf16 %v2592_v25  ;;  %v2593_v27 = vunpack.i.l.bf16 %v2592_v25  ;;  %v2637_v3 = vpop.permute.xlu2 %2636 }
 0x273   : > { %v2582_v28 = vpop.permute.xlu0 %2581  ;;  %v2639_v10 = vunpack.i.h.bf16 %v2637_v3  ;;  %v2638_v11 = vunpack.i.l.bf16 %v2637_v3 }
 0x274   : > { %v2584_v29 = vunpack.i.h.bf16 %v2582_v28  ;;  %v2583_v30 = vunpack.i.l.bf16 %v2582_v28  ;;  %v1037_v42 = vsel %vm1034_vm9, %v2593_v27, %v2594_v26  ;;  %v1190_v27 = vunpack.c.h.b16 %v1135_v12 }
 0x275   : > { %v1127_v43 = vpack.c.bf16 %v2594_v26, %v1037_v42  ;;  %v1110_v23 = vsel %vm1108_vm11, %v2638_v11, %v2639_v10  ;;  %v1189_v26 = vunpack.c.l.b16 %v1135_v12 }
 0x276   : > { %v1035_v44 = vsel %vm1034_vm9, %v2583_v30, %v2584_v29 }
 0x277   : > { %v1125_v52 = vpack.c.bf16 %v2584_v29, %v1035_v44  ;;  %v1173_v32 = vunpack.c.l.b16 %v1127_v43  ;;  %v1174_v4 = vunpack.c.h.b16 %v1127_v43  ;;  %v1138_v29 = vpack.c.bf16 %v1110_v23, %v2638_v11 }
 0x279   : > { %v2597_v45 = vpop.permute.xlu1 %2596  ;;  %v1169_v37 = vunpack.c.l.b16 %v1125_v52  ;;  %v1170_v38 = vunpack.c.h.b16 %v1125_v52  ;;  %v1195_v51 = vunpack.c.l.b16 %v1138_v29 }
 0x27a   : > { %v2599_v46 = vunpack.i.h.bf16 %v2597_v45  ;;  %v2598_v47 = vunpack.i.l.bf16 %v2597_v45 }
 0x27b   : > { %v2587_v48 = vpop.permute.xlu0 %2586 }
 0x27c   : > { %v2589_v49 = vunpack.i.h.bf16 %v2587_v48  ;;  %v2588_v50 = vunpack.i.l.bf16 %v2587_v48  ;;  %v1038_v53 = vsel %vm1034_vm9, %v2598_v47, %v2599_v46 }
 0x27d   : > { %v1128_v33 = vpack.c.bf16 %v2599_v46, %v1038_v53 }
 0x27e   : > { %v1036_v34 = vsel %vm1034_vm9, %v2588_v50, %v2589_v49 }
 0x27f   : > { %v1126_v35 = vpack.c.bf16 %v2589_v49, %v1036_v34  ;;  %v1175_v36 = vunpack.c.l.b16 %v1128_v33  ;;  %v1176_v5 = vunpack.c.h.b16 %v1128_v33  ;;  %v1196_v34 = vunpack.c.h.b16 %v1138_v29 }
 0x281   : > { %v1171_v39 = vunpack.c.l.b16 %v1126_v35  ;;  %v1172_v40 = vunpack.c.h.b16 %v1126_v35  ;;  %v2617_v41 = vpop.permute.xlu1 %2616  ;;  %v1207_v54 = vpack.c.b16 %v1175_v36, %v1173_v32  ;;  %v1208_v15 = vpack.c.b16 %v1176_v5, %v1174_v4 }
 0x282   : > { %v2619_v57 = vunpack.i.h.bf16 %v2617_v41  ;;  %v2618_v58 = vunpack.i.l.bf16 %v2617_v41 }
 0x283   : > { %v2612_v59 = vpop.permute.xlu0 %2611  ;;  %v1206_v60 = vpack.c.b16 %v1172_v40, %v1170_v38  ;;  %v1205_v61 = vpack.c.b16 %v1171_v39, %v1169_v37  ;;  %1233 = vrot.lane.b32.xlu2 %v1207_v54, %s3057_s23 }
 0x284   : > { %v2614_v62 = vunpack.i.h.bf16 %v2612_v59  ;;  %v2613_v63 = vunpack.i.l.bf16 %v2612_v59  ;;  %v1081_v0 = vsel %vm1079_vm10, %v2618_v58, %v2619_v57  ;;  %v1222_v59 = vpop.permute.xlu2 %1221 }
 0x285   : > { %1231 = vrot.lane.b32.xlu1 %v1206_v60, %s3057_s23  ;;  %1229 = vrot.lane.b32.xlu0 %v1205_v61, %s3057_s23  ;;  %v1134_v1 = vpack.c.bf16 %v1081_v0, %v2618_v58 }
 0x286   : > { %v1080_v2 = vsel %vm1079_vm10, %v2613_v63, %v2614_v62 }
 0x287   : > { %v1133_v6 = vpack.c.bf16 %v1080_v2, %v2613_v63  ;;  %v1187_v8 = vunpack.c.l.b16 %v1134_v1  ;;  %v1188_v21 = vunpack.c.h.b16 %v1134_v1 }
 0x289   : > { %v1185_v9 = vunpack.c.l.b16 %v1133_v6  ;;  %v2632_v13 = vpop.permute.xlu1 %2631  ;;  %v1186_v22 = vunpack.c.h.b16 %v1133_v6 }
 0x28a   : > { %v2634_v17 = vunpack.i.h.bf16 %v2632_v13  ;;  %v2633_v18 = vunpack.i.l.bf16 %v2632_v13 }
 0x28b   : > { %v2627_v14 = vpop.permute.xlu0 %2626  ;;  %v1213_v16 = vpack.c.b16 %v1187_v8, %v1185_v9  ;;  %v1214_v44 = vpack.c.b16 %v1188_v21, %v1186_v22 }
 0x28c   : > { %v2629_v19 = vunpack.i.h.bf16 %v2627_v14  ;;  %v2628_v20 = vunpack.i.l.bf16 %v2627_v14  ;;  %v1109_v25 = vsel %vm1108_vm11, %v2633_v18, %v2634_v17  ;;  %v1228_v60 = vpop.permute.xlu2 %1227 }
 0x28d   : > { %1235 = vrot.lane.b32.xlu0 %v1208_v15, %s3057_s23  ;;  %1245 = vrot.lane.b32.xlu2 %v1213_v16, %s3057_s23  ;;  %v1137_v43 = vpack.c.bf16 %v1109_v25, %v2633_v18 }
 0x28e   : > { %v1083_v24 = vsel %vm1079_vm10, %v2628_v20, %v2629_v19 }
 0x28f   : > { %v1136_v28 = vpack.c.bf16 %v1083_v24, %v2628_v20  ;;  %v1193_v32 = vunpack.c.l.b16 %v1137_v43  ;;  %v1194_v33 = vunpack.c.h.b16 %v1137_v43 }
 0x291   : > { %v1191_v30 = vunpack.c.l.b16 %v1136_v28  ;;  %v1192_v42 = vunpack.c.h.b16 %v1136_v28  ;;  %v2647_v45 = vpop.permute.xlu1 %2646  ;;  %v1218_v41 = vpack.c.b16 %v1196_v34, %v1194_v33  ;;  %v1217_v54 = vpack.c.b16 %v1195_v51, %v1193_v32 }
 0x292   : > { %v2649_v48 = vunpack.i.h.bf16 %v2647_v45  ;;  %v2648_v49 = vunpack.i.l.bf16 %v2647_v45 }
 0x293   : > { %v1215_v46 = vpack.c.b16 %v1191_v30, %v1189_v26  ;;  %v1216_v47 = vpack.c.b16 %v1192_v42, %v1190_v27  ;;  %v2642_v50 = vpop.permute.xlu0 %2641 }
 0x294   : > { %v2644_v52 = vunpack.i.h.bf16 %v2642_v50  ;;  %v2643_v53 = vunpack.i.l.bf16 %v2642_v50  ;;  %v1112_v35 = vsel %vm1108_vm11, %v2648_v49, %v2649_v48 }
 0x295   : > { %1249 = vrot.lane.b32.xlu1 %v1215_v46, %s3057_s23  ;;  %1247 = vrot.lane.b32.xlu0 %v1214_v44, %s3057_s23  ;;  %v1140_v36 = vpack.c.bf16 %v1112_v35, %v2648_v49 }
 0x296   : > { %1251 = vrot.lane.b32.xlu2 %v1216_v47, %s3057_s23  ;;  %v1111_v37 = vsel %vm1108_vm11, %v2643_v53, %v2644_v52 }
 0x297   : > { %v1139_v38 = vpack.c.bf16 %v1111_v37, %v2643_v53  ;;  %v1199_v39 = vunpack.c.l.b16 %v1140_v36  ;;  %v1200_v56 = vunpack.c.h.b16 %v1140_v36 }
 0x299   : > { %v1197_v40 = vunpack.c.l.b16 %v1139_v38  ;;  %v1198_v57 = vunpack.c.h.b16 %v1139_v38  ;;  %v1226_v61 = vpop.permute.xlu1 %1225 }
 0x29b   : > { %v1219_v55 = vpack.c.b16 %v1199_v39, %v1197_v40  ;;  %v1220_v58 = vpack.c.b16 %v1200_v56, %v1198_v57  ;;  %v1263_v40 = vsel %vm1261_vm12, %v1226_v61, %v1228_v60   ;;  %v1224_v62 = vpop.permute.xlu0 %1223 }
 0x29d   : > { %1255 = vrot.lane.b32.xlu1 %v1218_v41, %s3057_s23  ;;  %1253 = vrot.lane.b32.xlu0 %v1217_v54, %s3057_s23  ;;  %v1262_v41 = vsel %vm1261_vm12, %v1222_v59, %v1224_v62  }
 0x29e   : > { %1257 = vrot.lane.b32.xlu2 %v1219_v55, %s3057_s23 }
 0x2a5   : > { %1259 = vrot.lane.b32.xlu0 %v1220_v58, %s3057_s23 }
 0x2bd   : > { %v1240_v63 = vpop.permute.xlu2 %1239 }
 0x2d5   : > { %v1238_v0 = vpop.permute.xlu1 %1237 }
 0x2d6   : > { %v1266_v37 = vsel %vm1261_vm12, %v1238_v0, %v1240_v63  }
 0x2dd   : > { %v1244_v1 = vpop.permute.xlu1 %1243  ;;  %v1242_v2 = vpop.permute.xlu0 %1241 }
 0x2de   : > { %v1267_v36 = vsel %vm1261_vm12, %v1242_v2, %v1244_v1   ;;  %v1234_v3 = vpop.permute.xlu2 %1233 }
 0x2e7   : > { %v1246_v6 = vpop.permute.xlu2 %1245 }
 0x2f0   : > { %v1252_v8 = vpop.permute.xlu2 %1251 }
 0x2f7   : > { %v1232_v4 = vpop.permute.xlu1 %1231  ;;  %v1230_v5 = vpop.permute.xlu0 %1229 }
 0x2f8   : > { %v1264_v39 = vsel %vm1261_vm12, %v1230_v5, %v1232_v4   ;;  %v1258_v13 = vpop.permute.xlu2 %1257 }
 0x2ff   : > { %v1236_v7 = vpop.permute.xlu0 %1235 }
 0x300   : > { %v1265_v38 = vsel %vm1261_vm12, %v1234_v3, %v1236_v7  }
 0x307   : > { %v1250_v9 = vpop.permute.xlu1 %1249  ;;  %v1248_v10 = vpop.permute.xlu0 %1247 }
 0x308   : > { %v1269_v34 = vsel %vm1261_vm12, %v1250_v9, %v1252_v8   ;;  %v1268_v35 = vsel %vm1261_vm12, %v1246_v6, %v1248_v10  }
 0x30f   : > { %v1256_v11 = vpop.permute.xlu1 %1255  ;;  %v1254_v12 = vpop.permute.xlu0 %1253 }
 0x310   : > { %v1270_v33 = vsel %vm1261_vm12, %v1254_v12, %v1256_v11  }
 0x317   : > { %v1260_v14 = vpop.permute.xlu0 %1259 }
 0x318   : > { %v1271_v32 = vsel %vm1261_vm12, %v1258_v13, %v1260_v14  }
 0x319 PF: > { %1397 = vmatpush.bf16.msra.mxu0 %v3015_v34  ;;  %2235 = vmatpush.bf16.msra.mxu3 %v3015_v34  ;;  %v3058_v15 = vmov 0   ;;  %v1306_v16 = vld [vmem:[%s3239_s26 + $0x30] sm:$0xff]  ;;  %v2217_v17 = vld [vmem:[%s3234_s12 + $0x4] sm:$0xf]  ;;  %v2130_v18 = vld [vmem:[%s3234_s12 + $0x8] sm:$0xf0]  ;;  %v3043_v41 = vphi %v3003_v41, %v1262_v41   ;;  %v3039_v40 = vphi %v2999_v40, %v1263_v40   ;;  %v3035_v39 = vphi %v2995_v39, %v1264_v39   ;;  %v3031_v38 = vphi %v2991_v38, %v1265_v38   ;;  %v3027_v37 = vphi %v2987_v37, %v1266_v37   ;;  %v3023_v36 = vphi %v2983_v36, %v1267_v36   ;;  %v3019_v35 = vphi %v2979_v35, %v1268_v35   ;;  %v3015_v34 = vphi %v2975_v34, %v1269_v34   ;;  %v3011_v33 = vphi %v2971_v33, %v1270_v33   ;;  %v3007_v32 = vphi %v2967_v32, %v1271_v32  }
 0x31a   : > { %1432 = vmatpush.bf16.msra.mxu1 %v3007_v32  ;;  %2650 = vset.pattern.permute.xlu0 %v3058_v15  ;;  %v1304_v19 = vld [vmem:[%s3239_s26 + $0x20] sm:$0xff]  ;;  %v2133_v20 = vor.u32 %v2217_v17, %v2130_v18  ;;  %vm1384_vm13 = vcmask 261120   ;;  %v1307_v21 = vld [vmem:[%s3239_s26 + $0x38] sm:$0xff]  ;;  %v1305_v22 = vld [vmem:[%s3239_s26 + $0x28] sm:$0xff]  ;;  %p2186_p6 = scmp.ne.s32.totalorder %s2947_s20, 1 }
 0x31b   : > { %1340 = vperm.xlu0 %2650, %v1306_v16   ;;  %2651 = vset.pattern.permute.xlu1 %v3058_v15  ;;  %v1300_v23 = vld [vmem:[%s3239_s26] sm:$0xff]  ;;  %v2219_v24 = vld [vmem:[%s3234_s12 + $0x14] sm:$0xf]  ;;  %v2138_v25 = vld [vmem:[%s3234_s12 + $0x18] sm:$0xf0]  ;;  %s3766_s21 = sld [smem:[#allocation32_spill]] (!%p2186_p6) }
 0x31c   : > { %2652 = vset.pattern.permute.xlu2 %v3058_v15  ;;  %1330 = vperm.xlu1 %2651, %v1304_v19   ;;  %v1301_v26 = vld [vmem:[%s3239_s26 + $0x8] sm:$0xff]  ;;  %v2141_v27 = vor.u32 %v2219_v24, %v2138_v25  ;;  %v2128_v28 = vld [vmem:[%s3234_s12] sm:$0xf]  ;;  %v2136_v30 = vld [vmem:[%s3234_s12 + $0x10] sm:$0xf] }
 0x31d   : > { %1398 = vmatpush.bf16.msra.mxu0 %v3019_v35  ;;  %2236 = vmatpush.bf16.msra.mxu3 %v3019_v35  ;;  %v2218_v29 = vld [vmem:[%s3234_s12 + $0x4] sm:$0xf0]  ;;  %v2220_v42 = vld [vmem:[%s3234_s12 + $0x14] sm:$0xf0]  ;;  %v1302_v46 = vld [vmem:[%s3239_s26 + $0x10] sm:$0xff] }
 0x31e   : > { %1433 = vmatpush.bf16.msra.mxu1 %v3011_v33  ;;  %v2129_v43 = vor.u32 %v2218_v29, %v2128_v28  ;;  %v2137_v44 = vor.u32 %v2220_v42, %v2136_v30  ;;  %v1550_v45 = vld [vmem:[%s3249_s30 + $0x8] sm:$0xff]  ;;  %1320 = vperm.xlu2 %2652, %v1302_v46   ;;  %v1551_v47 = vld [vmem:[%s3249_s30 + $0x10] sm:$0xff]  ;;  %v2221_v48 = vld [vmem:[%s3234_s12 + $0x24] sm:$0xf] }
 0x31f   : > { %v2146_v49 = vld [vmem:[%s3234_s12 + $0x28] sm:$0xf0]  ;;  %v1553_v51 = vld [vmem:[%s3249_s30 + $0x20] sm:$0xff]  ;;  %v1303_v52 = vld [vmem:[%s3239_s26 + $0x18] sm:$0xff] }
 0x320   : > { %v2149_v50 = vor.u32 %v2221_v48, %v2146_v49  ;;  %v1554_v53 = vld [vmem:[%s3249_s30 + $0x28] sm:$0xff]  ;;  %v2144_v32 = vld [vmem:[%s3234_s12 + $0x20] sm:$0xf]  ;;  %v1556_v35 = vld [vmem:[%s3249_s30 + $0x38] sm:$0xff] }
 0x321   : > { %1399 = vmatpush.bf16.msra.mxu0 %v3023_v36  ;;  %2237 = vmatpush.bf16.msra.mxu3 %v3023_v36  ;;  %v2222_v33 = vld [vmem:[%s3234_s12 + $0x24] sm:$0xf0]  ;;  %v1549_v36 = vld [vmem:[%s3249_s30] sm:$0xff]  ;;  %v2224_v54 = vld [vmem:[%s3234_s12 + $0x34] sm:$0xf0]  ;;  %s3767_s29 = smov (!%p2186_p6), %s3766_s21 }
 0x322   : > { %2158 = vmatmul.msk.bf16.vlgmr.msra.gmra.mxu1 %vm1384_vm13, %v2133_v20  ;;  %v2145_v34 = vor.u32 %v2222_v33, %v2144_v32  ;;  %v1555_v56 = vld [vmem:[%s3249_s30 + $0x30] sm:$0xff] }
 0x323   : > { %1345 = vperm.xlu0 %2650, %v1307_v21  }
 0x324   : > { %1335 = vperm.xlu1 %2651, %v1305_v22  }
 0x325   : > { %1400 = vmatpush.bf16.msra.mxu0 %v3027_v37  ;;  %2238 = vmatpush.bf16.msra.mxu3 %v3027_v37  ;;  %v2223_v37 = vld [vmem:[%s3234_s12 + $0x34] sm:$0xf] }
 0x326   : > { %1325 = vperm.xlu2 %2652, %v1303_v52  }
 0x329   : > { %1401 = vmatpush.bf16.msra.mxu0 %v3031_v38  ;;  %2239 = vmatpush.bf16.msra.mxu3 %v3031_v38  ;;  %v2154_v38 = vld [vmem:[%s3234_s12 + $0x38] sm:$0xf0] }
 0x32b   : > { %1310 = vperm.xlu0 %2650, %v1300_v23  }
 0x32c   : > { %1315 = vperm.xlu1 %2651, %v1301_v26  }
 0x32d   : > { %1402 = vmatpush.bf16.msra.mxu0 %v3035_v39  ;;  %2240 = vmatpush.bf16.msra.mxu3 %v3035_v39  ;;  %v2157_v39 = vor.u32 %v2223_v37, %v2154_v38 }
 0x32e   : > { %1559 = vperm.xlu2 %2652, %v1549_v36  }
 0x331   : > { %1403 = vmatpush.bf16.msra.mxu0 %v3039_v40  ;;  %2241 = vmatpush.bf16.msra.mxu3 %v3039_v40  ;;  %v1552_v40 = vld [vmem:[%s3249_s30 + $0x18] sm:$0xff] }
 0x332   : > { %2159 = vmatmul.msk.bf16.gmra.mxu1 %vm1384_vm13, %v2141_v27 }
 0x333   : > { %1564 = vperm.xlu0 %2650, %v1550_v45  }
 0x334   : > { %1569 = vperm.xlu1 %2651, %v1551_v47  }
 0x335   : > { %1404 = vmatpush.bf16.msra.mxu0 %v3043_v41  ;;  %2242 = vmatpush.bf16.msra.mxu3 %v3043_v41  ;;  %v2152_v41 = vld [vmem:[%s3234_s12 + $0x30] sm:$0xf] }
 0x336   : > { %1574 = vperm.xlu2 %2652, %v1552_v40   ;;  %v2153_v55 = vor.u32 %v2224_v54, %v2152_v41 }
 0x338   : > { %1405 = vmatmul.bf16.vlgmr.msra.gmra.mxu0 %v2129_v43  ;;  %1410 = vmatmul.bf16.vlgmr.msra.gmra.mxu3 %v2137_v44 }
 0x33b   : > { %1579 = vperm.xlu0 %2650, %v1553_v51  }
 0x33c   : > { %1584 = vperm.xlu1 %2651, %v1554_v53  }
 0x33e   : > { %1589 = vperm.xlu2 %2652, %v1555_v56  }
 0x342   : > { %2160 = vmatmul.msk.bf16.gmra.mxu1 %vm1384_vm13, %v2149_v50 }
 0x343   : > { %1594 = vperm.xlu0 %2650, %v1556_v35  }
 0x348   : > { %1415 = vmatmul.bf16.gmra.mxu3 %v2145_v34 }
 0x352   : > { %2161 = vmatmul.msk.bf16.gmra.mxu1 %vm1384_vm13, %v2157_v39 }
 0x358   : > { %1420 = vmatmul.bf16.gmra.mxu3 %v2153_v55 }
 0x378   : > { %v1321_v48 = vpop.permute.xlu2 %1320 }
 0x38d   : > { %v1341_v3 = vpop.permute.xlu0 %1340 }
 0x38e   : > { %v1331_v0 = vpop.permute.xlu1 %1330 }
 0x395   : > { %v1346_v12 = vpop.permute.xlu0 %1345 }
 0x396   : > { %v1336_v7 = vpop.permute.xlu1 %1335 }
 0x39d   : > { %v1311_v24 = vpop.permute.xlu0 %1310 }
 0x39e   : > { %v1316_v25 = vpop.permute.xlu1 %1315 }
 0x39f   : > { %v1435_v57 = vpop.f32.mrf.mxu1 }
 0x3a7   : > { %v1437_v58 = vpop.f32.mrf.mxu1 }
 0x3af   : > { %v3512_v59 = vpop.f32.mrf.mxu1 }
 0x3b5   : > { %v1406_v14 = vpop.f32.mrf.mxu0 }
 0x3b6   : > { %v1407_v42 = vadd.f32 %v1406_v14, %v1311_v24 }
 0x3b7   : > { %v3516_v61 = vpop.f32.mrf.mxu1 }
 0x3b8   : > { %v1436_v51 = vadd.f32 %v1435_v57, %v1407_v42 }
 0x3bb   : > { %v3514_v60 = vpop.f32.mrf.mxu3 }
 0x3bd   : > { %v1408_v27 = vpop.f32.mrf.mxu0 }
 0x3be   : > { %v1409_v44 = vadd.f32 %v1408_v27, %v1316_v25 }
 0x3bf   : > { %v1445_v63 = vpop.f32.mrf.mxu1 }
 0x3c0   : > { %v1438_v53 = vadd.f32 %v1437_v58, %v1409_v44  ;;  %v2225_v44 = vld [vmem:[%s3244_s22] sm:$0xff] }
 0x3c3   : > { %v3518_v62 = vpop.f32.mrf.mxu3 }
 0x3c7   : > { %v1447_v6 = vpop.f32.mrf.mxu1 }
 0x3cb   : > { %v1416_v1 = vpop.f32.mrf.mxu3 }
 0x3cc   : > { %v1417_v2 = vadd.f32 %v1416_v1, %v1331_v0 }
 0x3ce   : > { %v1446_v4 = vadd.f32 %v1445_v63, %v1417_v2  ;;  %v1326_v63 = vpop.permute.xlu2 %1325 }
 0x3cf   : > { %v1450_v16 = vpop.f32.mrf.mxu1 }
 0x3d0   : > { %v2162_v5 = vmul.f32 -1.442695, %v1446_v4 }
 0x3d2   : > { %2653 = vpow2.f32 %v2162_v5 }
 0x3d3   : > { %v1418_v8 = vpop.f32.mrf.mxu3 }
 0x3d4   : > { %v1419_v9 = vadd.f32 %v1418_v8, %v1336_v7 }
 0x3d6   : > { %v1448_v10 = vadd.f32 %v1447_v6, %v1419_v9  ;;  %v1412_v6 = vadd.f32 %v3514_v60, %v1321_v48  ;;  %v1414_v9 = vadd.f32 %v3518_v62, %v1326_v63  ;;  %v1560_v48 = vpop.permute.xlu2 %1559 }
 0x3d7   : > { %v1452_v43 = vpop.f32.mrf.mxu1 }
 0x3d8   : > { %v2654_v11 = vpop.eup %2653  ;;  %v2163_v13 = vmul.f32 -1.442695, %v1448_v10  ;;  %v1441_v14 = vadd.f32 %v3512_v59, %v1412_v6 }
 0x3d9   : > { %v1471_v15 = vadd.f32 1.0, %v2654_v11 }
 0x3da   : > { %2655 = vpow2.f32 %v2163_v13 }
 0x3db   : > { %2657 = vrcp.f32 %v1471_v15  ;;  %v1421_v17 = vpop.f32.mrf.mxu3  ;;  %v1486_v34 = vand.u32 2147483648, %v1471_v15  ;;  %vm1480_vm15 = vweird.f32 %v1471_v15  ;;  %v1484_v36 = vand.u32 2147483647, %v1471_v15 }
 0x3dc   : > { %v1422_v18 = vadd.f32 %v1421_v17, %v1341_v3 }
 0x3dd   : > { %v1487_v55 = vor.u32 1.1754944e-38, %v1486_v34  ;;  %vm1485_vm3 = vcmp.eq.f32.partialorder %v1484_v36, 8.507059e+37 }
 0x3de   : > { %v1451_v19 = vadd.f32 %v1450_v16, %v1422_v18  ;;  %v1443_v16 = vadd.f32 %v3516_v61, %v1414_v9  ;;  %v1678_v9 = vld [vmem:[#allocation3] sm:$0xff] }
 0x3e0   : > { %v2656_v20 = vpop.eup %2655  ;;  %v2164_v21 = vmul.f32 -1.442695, %v1451_v19 }
 0x3e1   : > { %v2658_v22 = vpop.eup %2657  ;;  %v1472_v23 = vadd.f32 1.0, %v2656_v20 }
 0x3e2   : > { %2659 = vpow2.f32 %v2164_v21  ;;  %v1476_v26 = vmul.f32 %v2658_v22, %v1471_v15  ;;  %vm1481_vm14 = vweird.f32 %v2658_v22 }
 0x3e3   : > { %2661 = vrcp.f32 %v1472_v23  ;;  %v1423_v28 = vpop.f32.mrf.mxu3  ;;  %vm3523_vm0 = vmor %vm1480_vm15, %vm1481_vm14  ;;  %v1501_v39 = vand.u32 2147483648, %v1472_v23  ;;  %v1499_v41 = vand.u32 2147483647, %v1472_v23  ;;  %vm1495_vm2 = vweird.f32 %v1472_v23 }
 0x3e4   : > { %v1424_v29 = vadd.f32 %v1423_v28, %v1346_v12  ;;  %v1477_v30 = vsub.f32 1.0, %v1476_v26 }
 0x3e5   : > { %v1502_v3 = vor.u32 1.1754944e-38, %v1501_v39  ;;  %vm1500_vm5 = vcmp.eq.f32.partialorder %v1499_v41, 8.507059e+37  ;;  %v1570_v39 = vpop.permute.xlu1 %1569  ;;  %v1660_v41 = vld [vmem:[#allocation2 + $0x38] sm:$0xff] }
 0x3e6   : > { %v1453_v45 = vadd.f32 %v1452_v43, %v1424_v29  ;;  %v1478_v46 = vmul.f32 %v2658_v22, %v1477_v30 }
 0x3e8   : > { %v2660_v47 = vpop.eup %2659  ;;  %v2165_v49 = vmul.f32 -1.442695, %v1453_v45  ;;  %v1479_v33 = vadd.f32 %v2658_v22, %v1478_v46  ;;  %v2226_v45 = vld [vmem:[%s3244_s22 + $0x8] sm:$0xff]  ;;  %v2227_v46 = vld [vmem:[%s3244_s22 + $0x10] sm:$0xff] }
 0x3e9   : > { %v2662_v50 = vpop.eup %2661  ;;  %v3520_v52 = vadd.f32 1.0, %v2660_v47  ;;  %v2228_v47 = vld [vmem:[%s3244_s22 + $0x18] sm:$0xff] }
 0x3ea   : > { %2663 = vpow2.f32 %v2165_v49  ;;  %v1491_v32 = vmul.f32 %v2662_v50, %v1472_v23  ;;  %vm1496_vm1 = vweird.f32 %v2662_v50  ;;  %v1483_v40 = vsel %vm3523_vm0, %v2658_v22, %v1479_v33  ;;  %v1565_v33 = vpop.permute.xlu0 %1564 }
 0x3eb   : > { %2665 = vrcp.f32 %v3520_v52  ;;  %vm1497_vm4 = vmor %vm1495_vm2, %vm1496_vm1  ;;  %v1488_v1 = vsel %vm1485_vm3, %v1487_v55, %v1483_v40  ;;  %v1516_v19 = vand.u32 2147483648, %v3520_v52  ;;  %vm1510_vm7 = vweird.f32 %v3520_v52 }
 0x3ec   : > { %v1492_v35 = vsub.f32 1.0, %v1491_v32  ;;  %2667 = vtanh.f32 %v1436_v51  ;;  %v1514_v60 = vand.u32 2147483647, %v3520_v52 }
 0x3ed   : > { %2669 = vtanh.f32 %v1438_v53  ;;  %v1517_v23 = vor.u32 1.1754944e-38, %v1516_v19  ;;  %v1680_v19 = vld [vmem:[#allocation3 + $0x8] sm:$0xff] }
 0x3ee   : > { %v1493_v38 = vmul.f32 %v2662_v50, %v1492_v35  ;;  %vm1515_vm10 = vcmp.eq.f32.partialorder %v1514_v60, 8.507059e+37  ;;  %v1659_v35 = vld [vmem:[#allocation2 + $0x20] sm:$0xff] }
 0x3f0   : > { %v2664_v54 = vpop.eup %2663  ;;  %v1494_v56 = vadd.f32 %v2662_v50, %v1493_v38 }
 0x3f1   : > { %v2666_v57 = vpop.eup %2665  ;;  %v1474_v58 = vadd.f32 1.0, %v2664_v54 }
 0x3f2   : > { %v1506_v0 = vmul.f32 %v2666_v57, %v3520_v52  ;;  %v1498_v2 = vsel %vm1497_vm4, %v2662_v50, %v1494_v56  ;;  %v2668_v4 = vpop.eup %2667  ;;  %vm1511_vm6 = vweird.f32 %v2666_v57  ;;  %v1658_v50 = vld [vmem:[#allocation2 + $0x8] sm:$0xff]  ;;  %v3546_v52 = vperm.slane %v3280_v31, 0  ;;  %v1575_v56 = vpop.permute.xlu2 %1574 }
 0x3f3   : > { %2671 = vrcp.f32 %v1474_v58  ;;  %v2670_v5 = vpop.eup %2669  ;;  %v1503_v8 = vsel %vm1500_vm5, %v1502_v3, %v1498_v2  ;;  %v1535_v10 = vmul.f32 %v2668_v4, %v1488_v1  ;;  %vm1512_vm8 = vmor %vm1510_vm7, %vm1511_vm6  ;;  %v1531_v20 = vand.u32 2147483648, %v1474_v58  ;;  %v1580_v2 = vpop.permute.xlu0 %1579  ;;  %v1677_v4 = vld [vmem:[#allocation3 + $0x10] sm:$0xff] }
 0x3f4   : > { %v1507_v7 = vsub.f32 1.0, %v1506_v0  ;;  %v1536_v11 = vmul.f32 %v2670_v5, %v1503_v8  ;;  %2673 = vtanh.f32 %v1441_v14  ;;  %v1529_v59 = vand.u32 2147483647, %v1474_v58  ;;  %v1679_v14 = vld [vmem:[#allocation3 + $0x18] sm:$0xff] }
 0x3f5   : > { %2675 = vtanh.f32 %v1443_v16  ;;  %vm1525_vm11 = vweird.f32 %v1474_v58  ;;  %v1532_v25 = vor.u32 1.1754944e-38, %v1531_v20 }
 0x3f6   : > { %v1508_v12 = vmul.f32 %v2666_v57, %v1507_v7  ;;  %v1547_v13 = vpack.c.bf16 %v1536_v11, %v1535_v10  ;;  %vm1530_vm14 = vcmp.eq.f32.partialorder %v1529_v59, 8.507059e+37  ;;  %v1585_v7 = vpop.permute.xlu1 %1584 }
 0x3f8   : > { %v1509_v17 = vadd.f32 %v2666_v57, %v1508_v12 }
 0x3f9   : > { %v2672_v15 = vpop.eup %2671 }
 0x3fa   : > { %v1521_v18 = vmul.f32 %v2672_v15, %v1474_v58  ;;  %v1513_v21 = vsel %vm1512_vm8, %v2666_v57, %v1509_v17  ;;  %vm1526_vm9 = vweird.f32 %v2672_v15  ;;  %v2674_v26 = vpop.eup %2673  ;;  %v1661_v58 = vld [vmem:[#allocation2 + $0x50] sm:$0xff]  ;;  %v1590_v12 = vpop.permute.xlu2 %1589 }
 0x3fb   : > { %v1518_v24 = vsel %vm1515_vm10, %v1517_v23, %v1513_v21  ;;  %vm1527_vm12 = vmor %vm1525_vm11, %vm1526_vm9  ;;  %v2676_v28 = vpop.eup %2675  ;;  %v1595_v17 = vpop.permute.xlu0 %1594 }
 0x3fc   : > { %v1522_v62 = vsub.f32 1.0, %v1521_v18  ;;  %v1537_v30 = vmul.f32 %v2674_v26, %v1518_v24 }
 0x3fe   : > { %v1523_v22 = vmul.f32 %v2672_v15, %v1522_v62 }
 0x400   : > { %v1524_v61 = vadd.f32 %v2672_v15, %v1523_v22 }
 0x402   : > { %v1528_v27 = vsel %vm1527_vm12, %v2672_v15, %v1524_v61 }
 0x403   : > { %v1533_v29 = vsel %vm1530_vm14, %v1532_v25, %v1528_v27 }
 0x404   : > { %v1538_v42 = vmul.f32 %v2676_v28, %v1533_v29 }
 0x406   : > { %v1548_v43 = vpack.c.bf16 %v1538_v42, %v1537_v30 }
 0x408   : > { %1635 = vmatpush.bf16.msra.mxu2 %v1548_v43 }
 0x40c   : > { %1636 = vmatpush.bf16.msra.mxu2 %v1547_v13 }
 0x40f   : > { %2182 = vmatmul.msk.bf16.vlgmr.msra.gmra.mxu2 %vm1384_vm13, %v2225_v44 }
 0x41f   : > { %2183 = vmatmul.msk.bf16.gmra.mxu2 %vm1384_vm13, %v2226_v45 }
 0x42f   : > { %2184 = vmatmul.msk.bf16.gmra.mxu2 %vm1384_vm13, %v2227_v46 }
 0x43f   : > { %2185 = vmatmul.msk.bf16.gmra.mxu2 %vm1384_vm13, %v2228_v47 }
 0x492   : > { %v1638_v49 = vpop.f32.mrf.mxu2 }
 0x493   : > { %v1639_v51 = vadd.f32 %v1638_v49, %v1560_v48 }
 0x495   : > { %v1662_v53 = vadd.f32 %v1658_v50, %v1639_v51 }
 0x497   : > { %v1669_v32 = vmul.f32 %v3546_v52, %v1662_v53 }
 0x499   : > { %1673 = vst [vmem:[#allocation2 + $0x8] sm:$0xff] %v1669_v32 }
 0x49a   : > { %v1640_v34 = vpop.f32.mrf.mxu2 }
 0x49b   : > { %v1641_v36 = vadd.f32 %v1640_v34, %v1565_v33 }
 0x49d   : > { %v1663_v37 = vadd.f32 %v1659_v35, %v1641_v36 }
 0x49f   : > { %v1670_v38 = vmul.f32 %v3546_v52, %v1663_v37 }
 0x4a1   : > { %1674 = vst [vmem:[#allocation2 + $0x20] sm:$0xff] %v1670_v38 }
 0x4a2   : > { %v1643_v40 = vpop.f32.mrf.mxu2 }
 0x4a3   : > { %v1644_v54 = vadd.f32 %v1643_v40, %v1570_v39 }
 0x4a5   : > { %v1664_v55 = vadd.f32 %v1660_v41, %v1644_v54 }
 0x4a7   : > { %v1671_v31 = vmul.f32 %v3546_v52, %v1664_v55 }
 0x4a9   : > { %1675 = vst [vmem:[#allocation2 + $0x38] sm:$0xff] %v1671_v31 }
 0x4aa   : > { %v1645_v57 = vpop.f32.mrf.mxu2 }
 0x4ab   : > { %v1646_v63 = vadd.f32 %v1645_v57, %v1575_v56 }
 0x4ad   : > { %v1665_v0 = vadd.f32 %v1661_v58, %v1646_v63 }
 0x4af   : > { %v1672_v1 = vmul.f32 %v3546_v52, %v1665_v0 }
 0x4b1   : > { %1676 = vst [vmem:[#allocation2 + $0x50] sm:$0xff] %v1672_v1 }
 0x4b2   : > { %v1648_v3 = vpop.f32.mrf.mxu2 }
 0x4b3   : > { %v1649_v5 = vadd.f32 %v1648_v3, %v1580_v2 }
 0x4b5   : > { %v1681_v6 = vadd.f32 %v1677_v4, %v1649_v5 }
 0x4b7   : > { %1685 = vst [vmem:[#allocation3 + $0x10] sm:$0xff] %v1681_v6 }
 0x4ba   : > { %v1650_v8 = vpop.f32.mrf.mxu2 }
 0x4bb   : > { %v1651_v10 = vadd.f32 %v1650_v8, %v1585_v7 }
 0x4bd   : > { %v1682_v11 = vadd.f32 %v1678_v9, %v1651_v10 }
 0x4bf   : > { %1686 = vst [vmem:[#allocation3] sm:$0xff] %v1682_v11 }
 0x4c2   : > { %v1653_v13 = vpop.f32.mrf.mxu2 }
 0x4c3   : > { %v1654_v15 = vadd.f32 %v1653_v13, %v1590_v12 }
 0x4c5   : > { %v1683_v16 = vadd.f32 %v1679_v14, %v1654_v15 }
 0x4c7   : > { %1687 = vst [vmem:[#allocation3 + $0x18] sm:$0xff] %v1683_v16 }
 0x4ca   : > { %v1655_v18 = vpop.f32.mrf.mxu2 }
 0x4cb   : > { %v1656_v60 = vadd.f32 %v1655_v18, %v1595_v17  ;;  %1692 = sbr.rel (%p2186_p6) target bundleno = 1404 (0x57c), region = 76 }
 0x4cd   : > { %v1684_v62 = vadd.f32 %v1680_v19, %v1656_v60 }
 0x4cf   : > { %1688 = vst [vmem:[#allocation3 + $0x8] sm:$0xff] %v1684_v62 }
 0x4d0   : > { %v1695_v20 = vld [vmem:[#allocation3 + $0x18] sm:$0xff]  ;;  %v1693_v22 = vld [vmem:[#allocation3 + $0x10] sm:$0xff]  ;;  %v1694_v61 = vld [vmem:[#allocation3] sm:$0xff]  ;;  %v3059_v25 = vmov 0  }
 0x4d1   : > { %v1699_v59 = vmul.f32 %v1695_v20, %v3546_v52  ;;  %v1697_v24 = vmul.f32 %v1693_v22, %v3546_v52  ;;  %2677 = vset.pattern.permute.xlu0 %v3059_v25  ;;  %v1709_v26 = vld [vmem:[%s3715_s10 + $0x10] sm:$0xff]  ;;  %2678 = vset.pattern.permute.xlu1 %v3059_v25  ;;  %v1698_v27 = vmul.f32 %v1694_v61, %v3546_v52  ;;  %v1707_v28 = vld [vmem:[%s3715_s10] sm:$0xff]  ;;  %v1710_v42 = vld [vmem:[%s3715_s10 + $0x18] sm:$0xff] }
 0x4d2   : > { %1723 = vperm.xlu0 %2677, %v1709_v26   ;;  %1713 = vperm.xlu1 %2678, %v1707_v28   ;;  %v2230_v43 = vld [vmem:[%s3766_s21 + $0x8] sm:$0xff]  ;;  %v2229_v44 = vld [vmem:[%s3767_s29] sm:$0xff] }
 0x4d3   : > { %v1705_v30 = vpack.c.bf16 %v1698_v27, %v1697_v24  ;;  %v1708_v45 = vld [vmem:[%s3715_s10 + $0x8] sm:$0xff]  ;;  %v1770_v40 = vld [vmem:[%s3229_s17] sm:$0xff] }
 0x4d4   : > { %v1771_v63 = vld [vmem:[%s3229_s17 + $0x8] sm:$0xff] }
 0x4d6   : > { %v1696_v21 = vld [vmem:[#allocation3 + $0x8] sm:$0xff] }
 0x4d7   : > { %v1700_v23 = vmul.f32 %v1696_v21, %v3546_v52 }
 0x4d9   : > { %v1706_v29 = vpack.c.bf16 %v1700_v23, %v1699_v59 }
 0x4da   : > { %1728 = vperm.xlu0 %2677, %v1710_v42   ;;  %1718 = vperm.xlu1 %2678, %v1708_v45  }
 0x4db   : > { %2243 = vmatpush.bf16.msra.mxu1 %v1706_v29  ;;  %1753 = vmatpush.bf16.msra.mxu0 %v1706_v29 }
 0x4df   : > { %2244 = vmatpush.bf16.msra.mxu1 %v1705_v30  ;;  %1754 = vmatpush.bf16.msra.mxu0 %v1705_v30 }
 0x4e2   : > { %2196 = vmatmul.msk.bf16.vlgmr.msra.gmra.mxu1 %vm1384_vm13, %v2230_v43  ;;  %2195 = vmatmul.msk.bf16.vlgmr.msra.gmra.mxu0 %vm1384_vm13, %v2229_v44 }
 0x544   : > { %v1714_v46 = vpop.permute.xlu1 %1713  ;;  %v1724_v47 = vpop.permute.xlu0 %1723 }
 0x54c   : > { %v1719_v34 = vpop.permute.xlu1 %1718  ;;  %v1729_v35 = vpop.permute.xlu0 %1728 }
 0x55f   : > { %v1761_v48 = vpop.f32.mrf.mxu1  ;;  %v1756_v49 = vpop.f32.mrf.mxu0 }
 0x560   : > { %v1762_v50 = vadd.f32 %v1761_v48, %v1724_v47  ;;  %v1757_v51 = vadd.f32 %v1756_v49, %v1714_v46 }
 0x562   : > { %v1768_v53 = vmul.f32 %v1762_v50, %v3546_v52  ;;  %v1766_v32 = vmul.f32 %v1757_v51, %v3546_v52 }
 0x564   : > { %v1772_v33 = vmul.f32 1.442695, %v1768_v53  ;;  %1784 = vst [vmem:[%s3253_s11] sm:$0xff] %v1768_v53 }
 0x565   : > { %1782 = vst [vmem:[%s3251_s27] sm:$0xff] %v1766_v32 }
 0x566   : > { %2679 = vpow2.f32 %v1772_v33 }
 0x567   : > { %v1763_v36 = vpop.f32.mrf.mxu1  ;;  %v1758_v37 = vpop.f32.mrf.mxu0 }
 0x568   : > { %v1764_v38 = vadd.f32 %v1763_v36, %v1729_v35  ;;  %v1759_v39 = vadd.f32 %v1758_v37, %v1719_v34 }
 0x56a   : > { %v1769_v41 = vmul.f32 %v1764_v38, %v3546_v52  ;;  %v1767_v54 = vmul.f32 %v1759_v39, %v3546_v52 }
 0x56c   : > { %v2680_v55 = vpop.eup %2679  ;;  %v1774_v31 = vmul.f32 1.442695, %v1769_v41  ;;  %1785 = vst [vmem:[%s3253_s11 + $0x8] sm:$0xff] %v1769_v41 }
 0x56d   : > { %v1776_v56 = vmul.f32 %v2680_v55, %v1770_v40  ;;  %1783 = vst [vmem:[%s3251_s27 + $0x8] sm:$0xff] %v1767_v54 }
 0x56e   : > { %2681 = vpow2.f32 %v1774_v31 }
 0x56f   : > { %v1778_v57 = vadd.f32 %v1776_v56, %v1766_v32 }
 0x571   : > { %v1780_v58 = vmul.f32 %v1778_v57, %v3546_v52 }
 0x573   : > { %1786 = vst [vmem:[%s3255_s13] sm:$0xff] %v1780_v58 }
 0x574   : > { %v2682_v0 = vpop.eup %2681 }
 0x575   : > { %v1777_v1 = vmul.f32 %v2682_v0, %v1771_v63 }
 0x577   : > { %v1779_v2 = vadd.f32 %v1777_v1, %v1767_v54 }
 0x579   : > { %v1781_v3 = vmul.f32 %v1779_v2, %v3546_v52 }
 0x57b   : > { %1787 = vst [vmem:[%s3255_s13 + $0x8] sm:$0xff] %v1781_v3 }
 0x57c PF: > { %s3768_s23 = sld [smem:[#allocation23_spill]]  ;;  %s3596_s22 = sshll.u32 %s2951_s0, 4 }
 0x57d   : > { %s3771_s24 = sld [smem:[#allocation34_spill]]  ;;  %s1832_s16 = sshll.u32 %s3253_s11, 4  ;;  %s1833_s16 = int_to_ptr.vmem [resolvable:$true] %s1832_s16 }
 0x582   : > { %s3769_s12 = sadd.s32 4294967295, %s3768_s23  }
 0x583   : > { %s3593_s20 = sand.u32 1, %s3769_s12   ;;  %s1831_s28 = scalar_lea.hbm %s3771_s24, %s3596_s22 }
 0x584   : > { %s1834_s21 = sshll.u32 %s1831_s28, 4  ;;  %s3739_s19 = scalar_lea.sflag [#allocation10], %s3593_s20  ;;  %s1835_s21 = int_to_ptr.hbm [resolvable:$true] %s1834_s21 }
 0x585   : > { %s2709_s9 = sshra.s32 %s1835_s21, 4  ;;  %s2715_s12 = scalar_lea.hbm %s3771_s24, 32  ;;  %s2710_s9 = int_to_ptr.hbm [resolvable:$true] %s2709_s9 }
 0x586   : > { %s2711_s14 = scalar_lea.hbm %s2710_s9, 16  ;;  %p2716_p11 = scmp.lt.s32.totalorder %s2710_s9, %s3771_s24 }
 0x587   : > { %p2712_p7 = scmp.ne.s32.totalorder %s2710_s9, %s2711_s14  ;;  %p2717_p12 = scmp.lt.s32.totalorder %s2715_s12, %s2711_s14 }
 0x589   : > { %p2713_p8 = pnand %p2712_p7, %p3191_p3  ;;  %p2718_p13 = por %p2717_p12, %p2716_p11 }
 0x58b   : > { %p2714_p10 = pneg %p2713_p8 }
 0x58d   : > { %p2719_p0 = pnand %p2718_p13, %p2714_p10 }
 0x58f   : > { %2722 = shalt.err (!%p2719_p0)
}
 0x590   : > { %s3060_s11 = smov 128   ;;  %s3061_s17 = smov 8  }
 0x591   : > { %2246 = dma.vmem_to_hbm [thread:$0]  (%p3191_p3), %s1833_s16, 256, %s1835_s21, %s3739_s19, %s3060_s11, %s3060_s11, %s3061_s17  }
 0x592   : > { %s3772_s30 = sld [smem:[#allocation33_spill]]  ;;  %s1815_s9 = sshll.u32 %s3251_s27, 4  ;;  %s1816_s9 = int_to_ptr.vmem [resolvable:$true] %s1815_s9 }
 0x593   : > { %s1789_s18 = scalar_lea.sflag [#allocation8], %s3214_s25 }
 0x598   : > { %s1814_s28 = scalar_lea.hbm %s3772_s30, %s3596_s22  ;;  %s2743_s16 = scalar_lea.hbm %s3772_s30, 32 }
 0x599   : > { %s1817_s14 = sshll.u32 %s1814_s28, 4  ;;  %s1818_s14 = int_to_ptr.hbm [resolvable:$true] %s1817_s14 }
 0x59a   : > { %s2737_s23 = sshra.s32 %s1818_s14, 4  ;;  %s2738_s23 = int_to_ptr.hbm [resolvable:$true] %s2737_s23 }
 0x59b   : > { %s2739_s12 = scalar_lea.hbm %s2738_s23, 16  ;;  %p2744_p5 = scmp.lt.s32.totalorder %s2738_s23, %s3772_s30 }
 0x59c   : > { %p2740_p1 = scmp.ne.s32.totalorder %s2738_s23, %s2739_s12  ;;  %p2745_p6 = scmp.lt.s32.totalorder %s2743_s16, %s2739_s12 }
 0x59e   : > { %p2741_p2 = pnand %p2740_p1, %p3191_p3  ;;  %p2746_p7 = por %p2745_p6, %p2744_p5 }
 0x5a0   : > { %p2742_p4 = pneg %p2741_p2 }
 0x5a2   : > { %p2747_p8 = pnand %p2746_p7, %p2742_p4 }
 0x5a4   : > { %2750 = shalt.err (!%p2747_p8)
}
 0x5a5   : > { %2245 = dma.vmem_to_hbm [thread:$0]  (%p3191_p3), %s1816_s9, 256, %s1818_s14, %s1789_s18, %s3060_s11, %s3060_s11, %s3061_s17  }
 0x5a6   : > { %s3773_s3 = sld [smem:[#allocation35_spill]]  ;;  %s1849_s15 = sshll.u32 %s3255_s13, 4  ;;  %s1850_s15 = int_to_ptr.vmem [resolvable:$true] %s1849_s15 }
 0x5ac   : > { %s1848_s1 = scalar_lea.hbm %s3773_s3, %s3596_s22  ;;  %s2771_s21 = scalar_lea.hbm %s3773_s3, 32 }
 0x5ad   : > { %s1851_s19 = sshll.u32 %s1848_s1, 4  ;;  %s1852_s19 = int_to_ptr.hbm [resolvable:$true] %s1851_s19 }
 0x5ae   : > { %s2765_s28 = sshra.s32 %s1852_s19, 4  ;;  %s2766_s28 = int_to_ptr.hbm [resolvable:$true] %s2765_s28 }
 0x5af   : > { %s2767_s23 = scalar_lea.hbm %s2766_s28, 16  ;;  %p2772_p13 = scmp.lt.s32.totalorder %s2766_s28, %s3773_s3 }
 0x5b0   : > { %p2768_p10 = scmp.ne.s32.totalorder %s2766_s28, %s2767_s23  ;;  %p2773_p0 = scmp.lt.s32.totalorder %s2771_s21, %s2767_s23 }
 0x5b2   : > { %p2769_p11 = pnand %p2768_p10, %p3191_p3  ;;  %p2774_p1 = por %p2773_p0, %p2772_p13 }
 0x5b4   : > { %p2770_p12 = pneg %p2769_p11 }
 0x5b6   : > { %p2775_p2 = pnand %p2774_p1, %p2770_p12 }
 0x5b8   : > { %2778 = shalt.err (!%p2775_p2)
}
 0x5b9   : > { %s3774_s13 = scalar_lea.sflag [#allocation10], %s3593_s20  ;;  %s3775_s27 = sld [smem:[#allocation36_spill]] }
 0x5ba   : > { %2247 = dma.vmem_to_hbm [thread:$0]  (%p3191_p3), %s1850_s15, 256, %s1852_s19, %s3774_s13, %s3060_s11, %s3060_s11, %s3061_s17  }
 0x5bb   : > { %s3776_s1 = scalar_lea.vmem [#allocation12], %s3214_s25  ;;  %s1804_s12 = scalar_lea.sflag [#allocation13], %s3214_s25 }
 0x5bc   : > { %s1865_s28 = sshll.u32 %s3776_s1, 4  ;;  %s1866_s28 = int_to_ptr.vmem [resolvable:$true] %s1865_s28 }
 0x5bf   : > { %s1863_s2 = scalar_lea.hbm %s3775_s27, %s2951_s0  ;;  %s2799_s11 = scalar_lea.hbm %s3775_s27, 2 }
 0x5c0   : > { %s1867_s23 = sshll.u32 %s1863_s2, 4  ;;  %s1868_s23 = int_to_ptr.hbm [resolvable:$true] %s1867_s23 }
 0x5c1   : > { %s2793_s16 = sshra.s32 %s1868_s23, 4  ;;  %s2794_s16 = int_to_ptr.hbm [resolvable:$true] %s2793_s16 }
 0x5c2   : > { %s2795_s21 = scalar_lea.hbm %s2794_s16, 1  ;;  %p2800_p7 = scmp.lt.s32.totalorder %s2794_s16, %s3775_s27 }
 0x5c3   : > { %p2796_p4 = scmp.ne.s32.totalorder %s2794_s16, %s2795_s21  ;;  %p2801_p8 = scmp.lt.s32.totalorder %s2799_s11, %s2795_s21 }
 0x5c5   : > { %p2797_p5 = pnand %p2796_p4, %p3191_p3  ;;  %p2802_p10 = por %p2801_p8, %p2800_p7 }
 0x5c7   : > { %p2798_p6 = pneg %p2797_p5 }
 0x5c9   : > { %p2803_p11 = pnand %p2802_p10, %p2798_p6 }
 0x5cb   : > { %2806 = shalt.err (!%p2803_p11)
}
 0x5cc   : > { %2248 = dma.vmem_to_hbm [thread:$0]  (%p3191_p3), %s1866_s28, 16, %s1868_s23, %s1804_s12  }
 0x5cd PF: > { %s3777_s0 = sld [smem:[#allocation23_spill]] }
 0x5ce   : > { %s3778_s25 = sld [smem:[#allocation18_spill]] }
 0x5d3   : > { %p2266_p12 = scmp.ge.s32.totalorder %s3777_s0, 2 }
 0x5d4   : > { %s1879_s14 = sand.u32 1, %s3778_s25  }
 0x5d5   : > { %p2254_p13 = pnand %p2266_p12, %p3203_p9  ;;  %s1880_s13 = scalar_lea.sflag [#allocation8], %s1879_s14 }
 0x5d7   : > { %p2255_p0 = pneg %p2254_p13 }
 0x5d9   : > { %2922 = dma.done.wait (%p2255_p0), %s1880_s13, 256  }
 0x5da   : > { %2924 = vsyncadd (%p2255_p0), %s1880_s13, 4294967040  ;;  %s3780_s22 = sadd.s32 4294967294, %s3777_s0  }
 0x5db   : > { %s1889_s18 = sand.u32 1, %s3780_s22  }
 0x5dc   : > { %s1890_s2 = scalar_lea.sflag [#allocation10], %s1889_s18 }
 0x5dd   : > { %2926 = dma.done.wait (%p2255_p0), %s1890_s2, 512  }
 0x5de   : > { %2928 = vsyncadd (%p2255_p0), %s1890_s2, 4294966784  ;;  %s1910_s26 = scalar_lea.sflag [#allocation13], %s1879_s14 }
 0x5df   : > { %2930 = dma.done.wait (%p2255_p0), %s1910_s26, 16  }
 0x5e0   : > { %2932 = vsyncadd (%p2255_p0), %s1910_s26, 4294967280  ;;  %s42_s23 = sadd.s32 1, %s3777_s0   ;;  %s3781_s17 = sld [smem:[#allocation19_spill]] }
 0x5e1   : > { %p39_p3 = scmp.ge.s32.totalorder %s42_s23, 6   ;;  %s3782_s18 = sld [smem:[#allocation20_spill]] }
 0x5e2   : > { %s3783_s19 = sld [smem:[#allocation28_spill]] }
 0x5e3   : > { %s3784_s20 = sld [smem:[#allocation21_spill]]  ;;  %41 = sbr.rel (!%p39_p3) target bundleno = 22 (0x16), region = 175 }
 0x5e4   : > { %s3785_s0 = sld [smem:[#allocation22_spill]] }
 0x5e5   : > { %s3786_s21 = sld [smem:[#allocation24_spill]] }
 0x5e6   : > { %s3787_s22 = sld [smem:[#allocation26_spill]] }
 0x5e8   :  { %1915 = vsyncpa [#allocation8], 1 }
 0x5e9   :  { %1917 = vsyncpa [#allocation8 + $0x1], 1 }
 0x5ea   :  { %1918 = vsyncpa [#allocation10], 1 }
 0x5eb   :  { %1920 = vsyncpa [#allocation10 + $0x1], 1 }
 0x5ec   :  { %1921 = vsyncpa [#allocation13], 1 }
 0x5ed   :  { %1923 = vsyncpa [#allocation13 + $0x1], 1 }

</bundles_post_ra>
